<compile_context>
chip_gen: v7x
topology: tpu7x:2x2x1
jax: 0.10.0
libtpu: 0.0.40
codegen_flags: <defaults>
</compile_context>

<pallas_src>
import functools

import jax
import jax.numpy as jnp
from jax import lax
from jax.experimental import pallas as pl
from jax.experimental.pallas import tpu as pltpu


def _urblock_kernel(x_ref, w1_ref, b1_ref, w2_ref, b2_ref, wf_ref, b3_ref,
                    g_ref, pin_ref, pmid_ref, out_ref, *, H, R, eps):
    f32 = jnp.float32
    bf16 = jnp.bfloat16
    inv_r = 1.0 / R

    x = x_ref[...]                                   # (R, W*Cin) f32 slab

    def bn_relu(v, p_ref):
        # Single-pass batch stats: one read gives sum and sum-of-squares;
        # the constant matrix P averages over w and broadcasts the per-channel
        # value back to every (w, c) lane. var = E[x^2] - mean^2.
        s = jnp.concatenate([jnp.sum(v, axis=0, keepdims=True),
                             jnp.sum(v * v, axis=0, keepdims=True)], axis=0)
        st = jnp.dot(s, p_ref[...], preferred_element_type=f32) * inv_r
        mean = st[0:1, :]
        var = jnp.maximum(st[1:2, :] - mean * mean, 0.0)
        return jnp.maximum((v - mean) * lax.rsqrt(var + eps), 0.0)

    # bnorm1 / bnorms (identical at init: same input, gamma=1, beta=0) + relu
    xa = bn_relu(x, pin_ref)

    # conv1 (1x1) as a lane-dense block-diagonal matmul; bf16 ops, f32 accum
    h1 = jnp.dot(xa.astype(bf16), w1_ref[...],
                 preferred_element_type=f32) + b1_ref[...]
    h1 = bn_relu(h1, pmid_ref)                       # bnorm2 + relu

    # conv2 (3x3 'same') as ONE matmul: LHS = [rows shifted by dy=-1 | dy=0 |
    # dy=+1] (per-image row masks), RHS = stacked block-tridiagonal weights
    # that already encode the dx taps and their zero padding.
    L1 = h1.shape[1]
    h_idx = lax.broadcasted_iota(jnp.int32, (R, 1), 0) % H
    up_ok = (h_idx > 0).astype(f32)                  # row h-1 exists in image
    dn_ok = (h_idx < H - 1).astype(f32)              # row h+1 exists in image
    zrow = jnp.zeros((1, L1), f32)
    d_m1 = jnp.concatenate([zrow, h1[:-1, :]], axis=0) * up_ok   # h1[r-1]
    d_p1 = jnp.concatenate([h1[1:, :], zrow], axis=0) * dn_ok    # h1[r+1]
    lhs2 = jnp.concatenate([d_m1, h1, d_p1], axis=1)             # (R, 3*L1)
    h2 = jnp.dot(lhs2.astype(bf16), w2_ref[...],
                 preferred_element_type=f32) + b2_ref[...]
    h2 = bn_relu(h2, pmid_ref)                       # bnorm3 + relu

    # conv3 (1x1, bias) + shortcut (1x1, no bias) fused into one matmul
    lhs3 = jnp.concatenate([h2, xa], axis=1)         # (R, L1 + W*Cin)
    y = jnp.dot(lhs3.astype(bf16), wf_ref[...],
                preferred_element_type=f32) + b3_ref[...]

    # grouped channel-sum residual r (raw input path kept in f32)
    y = y + jnp.dot(x, g_ref[...], preferred_element_type=f32)

    out_ref[...] = y.astype(out_ref.dtype)           # (R, W*Cout), 128 lanes


def init_params(key, in_chans, k):
    Cin = in_chans * k
    C1 = in_chans // 2
    Cout = in_chans
    ks = jax.random.split(key, 4)

    def xavier(kk, shape, fan_in, fan_out):
        a = (6.0 / (fan_in + fan_out)) ** 0.5
        return jax.random.uniform(kk, shape, jnp.float32, -a, a)

    w1 = xavier(ks[0], (Cin, C1), Cin, C1)               # conv1 1x1, [ci, co]
    w2 = xavier(ks[1], (3, 3, C1, C1), C1 * 9, C1 * 9)   # conv2 3x3, HWIO
    w3 = xavier(ks[2], (C1, Cout), C1, Cout)             # conv3 1x1, [ci, co]
    ws = xavier(ks[3], (Cin, Cout), Cin, Cout)           # shortcut, no bias
    return dict(w1=w1, b1=jnp.zeros((C1,), jnp.float32),
                w2=w2, b2=jnp.zeros((C1,), jnp.float32),
                w3=w3, b3=jnp.zeros((Cout,), jnp.float32),
                ws=ws)


def _pack_slab_params(params, W, in_chans, k, mm_dtype=jnp.bfloat16):
    """Repack per-channel weights into lane-dense slab-layout constants."""
    Cin = in_chans * k
    C1 = in_chans // 2
    f32 = jnp.float32
    eye_w = jnp.eye(W, dtype=f32)

    w1s = jnp.kron(eye_w, params["w1"])                      # (W*Cin, W*C1)
    b1s = jnp.tile(params["b1"], W)[None, :]                 # (1, W*C1)

    # conv2: for each dy build a block-tridiagonal (W*C1, W*C1) matrix whose
    # off-diagonals carry the dx=+-1 taps (dx zero padding falls out for free)
    blocks = []
    for dy in (-1, 0, 1):
        m = jnp.zeros((W * C1, W * C1), f32)
        for dx in (-1, 0, 1):
            m = m + jnp.kron(jnp.eye(W, k=-dx, dtype=f32),
                             params["w2"][dy + 1, dx + 1])
        blocks.append(m)
    w2s = jnp.concatenate(blocks, axis=0)                    # (3*W*C1, W*C1)
    b2s = jnp.tile(params["b2"], W)[None, :]

    # conv3 + shortcut fused along the contraction axis
    wfs = jnp.concatenate([jnp.kron(eye_w, params["w3"]),
                           jnp.kron(eye_w, params["ws"])], axis=0)
    b3s = jnp.tile(params["b3"], W)[None, :]                 # (1, W*Cout)

    # grouped channel-sum residual as a constant 0/1 block-diag matrix (f32)
    gk = (jnp.arange(Cin)[:, None] // k ==
          jnp.arange(in_chans)[None, :]).astype(f32)
    gs = jnp.kron(eye_w, gk)                                 # (W*Cin, W*Cout)

    # BatchNorm per-channel average-over-w + broadcast-back matrices
    ones_w = jnp.ones((W, W), f32) / W
    p_in = jnp.kron(ones_w, jnp.eye(Cin, dtype=f32))         # (W*Cin, W*Cin)
    p_mid = jnp.kron(ones_w, jnp.eye(C1, dtype=f32))         # (W*C1, W*C1)

    return dict(w1s=w1s.astype(mm_dtype), b1s=b1s,
                w2s=w2s.astype(mm_dtype), b2s=b2s,
                wfs=wfs.astype(mm_dtype), b3s=b3s,
                gs=gs, p_in=p_in, p_mid=p_mid)


def urblock_forward(bs, ts, params, *, in_chans, k):
    # bs, ts: NCHW (PyTorch convention)
    Bs = jnp.concatenate([bs, ts], axis=1)                   # (N, Cin, H, W)
    N, Cin, H, W = Bs.shape
    assert Cin == in_chans * k
    Cout = in_chans
    R = N * H

    # lane-dense slab: rows = (n, h), lanes = (w, c) with c minor
    x_slab = jnp.transpose(Bs, (0, 2, 3, 1)).reshape(R, W * Cin)

    sp = _pack_slab_params(params, W, in_chans, k)
    args = (x_slab, sp["w1s"], sp["b1s"], sp["w2s"], sp["b2s"],
            sp["wfs"], sp["b3s"], sp["gs"], sp["p_in"], sp["p_mid"])

    # VMEM budget from actual footprint (inputs + output, double-buffered,
    # plus headroom for in-kernel intermediates), capped below v7x physical.
    io_bytes = sum(int(a.size) * a.dtype.itemsize for a in args)
    io_bytes += R * W * Cout * 4
    vmem_limit = int(min(64 << 20, max(4 * io_bytes + (8 << 20), 16 << 20)))

    kern = functools.partial(_urblock_kernel, H=H, R=R, eps=1e-5)

    def full(arr):
        return pl.BlockSpec(arr.shape, lambda i: (0, 0))

    out_slab = pl.pallas_call(
        kern,
        grid=(1,),
        in_specs=[full(a) for a in args],
        out_specs=pl.BlockSpec((R, W * Cout), lambda i: (0, 0)),
        out_shape=jax.ShapeDtypeStruct((R, W * Cout), jnp.float32),
        compiler_params=pltpu.CompilerParams(
            dimension_semantics=("arbitrary",),
            vmem_limit_bytes=vmem_limit),
    )(*args)

    return jnp.transpose(out_slab.reshape(N, H, W, Cout), (0, 3, 1, 2))


if __name__ == "__main__":
    in_chans, k = 8, 2
    N, H, W = 2, 16, 16
    c_bs = in_chans * k // 2              # bs channels
    c_ts = in_chans * k - c_bs            # ts channels (concat -> in_chans*k)

    key = jax.random.PRNGKey(0)
    k1, k2, k3 = jax.random.split(key, 3)
    bs = jax.random.normal(k1, (N, c_bs, H, W), jnp.float32)
    ts = jax.random.normal(k2, (N, c_ts, H, W), jnp.float32)
    params = init_params(k3, in_chans, k)

    out = urblock_forward(bs, ts, params, in_chans=in_chans, k=k)
    jax.block_until_ready(out)
    assert out.shape == (N, in_chans, H, W)
    print("KERNEL_OK")
</pallas_src>

<mosaic_0001>
module attributes {stable_mosaic.version = 11 : i64} {
  func.func @_urblock_kernel(%arg0: i32, %arg1: memref<32x256xf32, #tpu.memory_space<vmem>>, %arg2: memref<256x64xbf16, #tpu.memory_space<vmem>>, %arg3: memref<1x64xf32, #tpu.memory_space<vmem>>, %arg4: memref<192x64xbf16, #tpu.memory_space<vmem>>, %arg5: memref<1x64xf32, #tpu.memory_space<vmem>>, %arg6: memref<320x128xbf16, #tpu.memory_space<vmem>>, %arg7: memref<1x128xf32, #tpu.memory_space<vmem>>, %arg8: memref<256x128xf32, #tpu.memory_space<vmem>>, %arg9: memref<256x256xf32, #tpu.memory_space<vmem>>, %arg10: memref<64x64xf32, #tpu.memory_space<vmem>>, %arg11: memref<32x128xf32, #tpu.memory_space<vmem>>) attributes {dimension_semantics = [#tpu.dimension_semantics<arbitrary>], iteration_bounds = array<i64: 1>, scalar_prefetch = 0 : i64, scratch_operands = 0 : i64, tpu.core_type = #tpu.core_type<tc>, window_params = [{pipeline_mode = #tpu.pipeline_mode<synchronous>, transform_indices = @transform_0, window_bounds = array<i64: 32, 256>}, {pipeline_mode = #tpu.pipeline_mode<synchronous>, transform_indices = @transform_1, window_bounds = array<i64: 256, 64>}, {pipeline_mode = #tpu.pipeline_mode<synchronous>, transform_indices = @transform_2, window_bounds = array<i64: 1, 64>}, {pipeline_mode = #tpu.pipeline_mode<synchronous>, transform_indices = @transform_3, window_bounds = array<i64: 192, 64>}, {pipeline_mode = #tpu.pipeline_mode<synchronous>, transform_indices = @transform_4, window_bounds = array<i64: 1, 64>}, {pipeline_mode = #tpu.pipeline_mode<synchronous>, transform_indices = @transform_5, window_bounds = array<i64: 320, 128>}, {pipeline_mode = #tpu.pipeline_mode<synchronous>, transform_indices = @transform_6, window_bounds = array<i64: 1, 128>}, {pipeline_mode = #tpu.pipeline_mode<synchronous>, transform_indices = @transform_7, window_bounds = array<i64: 256, 128>}, {pipeline_mode = #tpu.pipeline_mode<synchronous>, transform_indices = @transform_8, window_bounds = array<i64: 256, 256>}, {pipeline_mode = #tpu.pipeline_mode<synchronous>, transform_indices = @transform_9, window_bounds = array<i64: 64, 64>}, {pipeline_mode = #tpu.pipeline_mode<synchronous>, transform_indices = @transform_10, window_bounds = array<i64: 32, 128>}]} {
    %c0 = arith.constant 0 : index
    %c0_0 = arith.constant 0 : index
    %0 = vector.load %arg1[%c0, %c0_0] : memref<32x256xf32, #tpu.memory_space<vmem>>, vector<32x256xf32>
    %cst = arith.constant dense<0.000000e+00> : vector<256xf32>
    %1 = vector.multi_reduction <add>, %0, %cst [0] : vector<32x256xf32> to vector<256xf32>
    %2 = vector.shape_cast %1 : vector<256xf32> to vector<1x256xf32>
    %3 = arith.mulf %0, %0 : vector<32x256xf32>
    %cst_1 = arith.constant dense<0.000000e+00> : vector<256xf32>
    %4 = vector.multi_reduction <add>, %3, %cst_1 [0] : vector<32x256xf32> to vector<256xf32>
    %5 = vector.shape_cast %4 : vector<256xf32> to vector<1x256xf32>
    %6 = tpu.concatenate %2, %5 in 0 : vector<1x256xf32>, vector<1x256xf32> -> vector<2x256xf32>
    %c0_2 = arith.constant 0 : index
    %c0_3 = arith.constant 0 : index
    %7 = vector.load %arg9[%c0_2, %c0_3] : memref<256x256xf32, #tpu.memory_space<vmem>>, vector<256x256xf32>
    %cst_4 = arith.constant dense<0.000000e+00> : vector<2x256xf32>
    %8 = tpu.matmul %6, %7, %cst_4 {dimension_numbers = #tpu.dot_dimension_numbers<[1], [0], [0], [1], [0, 0, 1, 1], [], []>} : vector<2x256xf32>, vector<256x256xf32>, vector<2x256xf32> -> vector<2x256xf32>
    %cst_5 = arith.constant 3.125000e-02 : f32
    %9 = vector.broadcast %cst_5 : f32 to vector<2x256xf32>
    %10 = arith.mulf %8, %9 : vector<2x256xf32>
    %11 = vector.extract_strided_slice %10 {offsets = [0, 0], sizes = [1, 256], strides = [1, 1]} : vector<2x256xf32> to vector<1x256xf32>
    %12 = vector.extract_strided_slice %10 {offsets = [1, 0], sizes = [1, 256], strides = [1, 1]} : vector<2x256xf32> to vector<1x256xf32>
    %13 = arith.mulf %11, %11 : vector<1x256xf32>
    %14 = arith.subf %12, %13 : vector<1x256xf32>
    %cst_6 = arith.constant 0.000000e+00 : f32
    %15 = vector.broadcast %cst_6 : f32 to vector<1x256xf32>
    %16 = arith.maximumf %14, %15 : vector<1x256xf32>
    %17 = vector.broadcast %11 : vector<1x256xf32> to vector<32x256xf32>
    %18 = arith.subf %0, %17 : vector<32x256xf32>
    %cst_7 = arith.constant 9.99999974E-6 : f32
    %19 = vector.broadcast %cst_7 : f32 to vector<1x256xf32>
    %20 = arith.addf %16, %19 : vector<1x256xf32>
    %21 = math.rsqrt %20 : vector<1x256xf32>
    %22 = vector.broadcast %21 : vector<1x256xf32> to vector<32x256xf32>
    %23 = arith.mulf %18, %22 : vector<32x256xf32>
    %cst_8 = arith.constant 0.000000e+00 : f32
    %24 = vector.broadcast %cst_8 : f32 to vector<32x256xf32>
    %25 = arith.maximumf %23, %24 : vector<32x256xf32>
    %26 = arith.truncf %25 : vector<32x256xf32> to vector<32x256xbf16>
    %c0_9 = arith.constant 0 : index
    %c0_10 = arith.constant 0 : index
    %27 = vector.load %arg2[%c0_9, %c0_10] : memref<256x64xbf16, #tpu.memory_space<vmem>>, vector<256x64xbf16>
    %cst_11 = arith.constant dense<0.000000e+00> : vector<32x64xf32>
    %28 = tpu.matmul %26, %27, %cst_11 {dimension_numbers = #tpu.dot_dimension_numbers<[1], [0], [0], [1], [0, 0, 1, 1], [], []>} : vector<32x256xbf16>, vector<256x64xbf16>, vector<32x64xf32> -> vector<32x64xf32>
    %c0_12 = arith.constant 0 : index
    %c0_13 = arith.constant 0 : index
    %29 = vector.load %arg3[%c0_12, %c0_13] : memref<1x64xf32, #tpu.memory_space<vmem>>, vector<1x64xf32>
    %30 = vector.broadcast %29 : vector<1x64xf32> to vector<32x64xf32>
    %31 = arith.addf %28, %30 : vector<32x64xf32>
    %cst_14 = arith.constant dense<0.000000e+00> : vector<64xf32>
    %32 = vector.multi_reduction <add>, %31, %cst_14 [0] : vector<32x64xf32> to vector<64xf32>
    %33 = vector.shape_cast %32 : vector<64xf32> to vector<1x64xf32>
    %34 = arith.mulf %31, %31 : vector<32x64xf32>
    %cst_15 = arith.constant dense<0.000000e+00> : vector<64xf32>
    %35 = vector.multi_reduction <add>, %34, %cst_15 [0] : vector<32x64xf32> to vector<64xf32>
    %36 = vector.shape_cast %35 : vector<64xf32> to vector<1x64xf32>
    %37 = tpu.concatenate %33, %36 in 0 : vector<1x64xf32>, vector<1x64xf32> -> vector<2x64xf32>
    %c0_16 = arith.constant 0 : index
    %c0_17 = arith.constant 0 : index
    %38 = vector.load %arg10[%c0_16, %c0_17] : memref<64x64xf32, #tpu.memory_space<vmem>>, vector<64x64xf32>
    %cst_18 = arith.constant dense<0.000000e+00> : vector<2x64xf32>
    %39 = tpu.matmul %37, %38, %cst_18 {dimension_numbers = #tpu.dot_dimension_numbers<[1], [0], [0], [1], [0, 0, 1, 1], [], []>} : vector<2x64xf32>, vector<64x64xf32>, vector<2x64xf32> -> vector<2x64xf32>
    %cst_19 = arith.constant 3.125000e-02 : f32
    %40 = vector.broadcast %cst_19 : f32 to vector<2x64xf32>
    %41 = arith.mulf %39, %40 : vector<2x64xf32>
    %42 = vector.extract_strided_slice %41 {offsets = [0, 0], sizes = [1, 64], strides = [1, 1]} : vector<2x64xf32> to vector<1x64xf32>
    %43 = vector.extract_strided_slice %41 {offsets = [1, 0], sizes = [1, 64], strides = [1, 1]} : vector<2x64xf32> to vector<1x64xf32>
    %44 = arith.mulf %42, %42 : vector<1x64xf32>
    %45 = arith.subf %43, %44 : vector<1x64xf32>
    %cst_20 = arith.constant 0.000000e+00 : f32
    %46 = vector.broadcast %cst_20 : f32 to vector<1x64xf32>
    %47 = arith.maximumf %45, %46 : vector<1x64xf32>
    %48 = vector.broadcast %42 : vector<1x64xf32> to vector<32x64xf32>
    %49 = arith.subf %31, %48 : vector<32x64xf32>
    %cst_21 = arith.constant 9.99999974E-6 : f32
    %50 = vector.broadcast %cst_21 : f32 to vector<1x64xf32>
    %51 = arith.addf %47, %50 : vector<1x64xf32>
    %52 = math.rsqrt %51 : vector<1x64xf32>
    %53 = vector.broadcast %52 : vector<1x64xf32> to vector<32x64xf32>
    %54 = arith.mulf %49, %53 : vector<32x64xf32>
    %cst_22 = arith.constant 0.000000e+00 : f32
    %55 = vector.broadcast %cst_22 : f32 to vector<32x64xf32>
    %56 = arith.maximumf %54, %55 : vector<32x64xf32>
    %57 = tpu.iota {dimensions = array<i32: 0>} : vector<32x1xi32>
    %c16_i32 = arith.constant 16 : i32
    %c0_i32 = arith.constant 0 : i32
    %58 = arith.cmpi eq, %c16_i32, %c0_i32 : i32
    %c1_i32 = arith.constant 1 : i32
    %59 = arith.select %58, %c1_i32, %c16_i32 : i32
    %60 = vector.broadcast %59 : i32 to vector<32x1xi32>
    %61 = arith.remsi %57, %60 : vector<32x1xi32>
    %c0_i32_23 = arith.constant 0 : i32
    %62 = vector.broadcast %c0_i32_23 : i32 to vector<32x1xi32>
    %63 = arith.cmpi ne, %61, %62 : vector<32x1xi32>
    %c0_i32_24 = arith.constant 0 : i32
    %64 = vector.broadcast %c0_i32_24 : i32 to vector<32x1xi32>
    %65 = arith.cmpi slt, %61, %64 : vector<32x1xi32>
    %c0_i32_25 = arith.constant 0 : i32
    %66 = arith.cmpi slt, %59, %c0_i32_25 : i32
    %67 = vector.broadcast %66 : i1 to vector<32x1xi1>
    %68 = vector.broadcast %67 : vector<32x1xi1> to vector<32x1xi1>
    %69 = arith.xori %65, %68 : vector<32x1xi1>
    %70 = arith.andi %69, %63 : vector<32x1xi1>
    %71 = vector.broadcast %59 : i32 to vector<32x1xi32>
    %72 = arith.addi %61, %71 : vector<32x1xi32>
    %73 = arith.select %70, %72, %61 : vector<32x1xi1>, vector<32x1xi32>
    %c0_i32_26 = arith.constant 0 : i32
    %74 = vector.broadcast %c0_i32_26 : i32 to vector<32x1xi32>
    %75 = arith.cmpi sgt, %73, %74 : vector<32x1xi32>
    %76 = arith.extui %75 : vector<32x1xi1> to vector<32x1xi32>
    %77 = arith.sitofp %76 : vector<32x1xi32> to vector<32x1xf32>
    %c15_i32 = arith.constant 15 : i32
    %78 = vector.broadcast %c15_i32 : i32 to vector<32x1xi32>
    %79 = arith.cmpi slt, %73, %78 : vector<32x1xi32>
    %80 = arith.extui %79 : vector<32x1xi1> to vector<32x1xi32>
    %81 = arith.sitofp %80 : vector<32x1xi32> to vector<32x1xf32>
    %cst_27 = arith.constant 0.000000e+00 : f32
    %82 = vector.broadcast %cst_27 : f32 to vector<1x64xf32>
    %83 = vector.extract_strided_slice %56 {offsets = [0, 0], sizes = [31, 64], strides = [1, 1]} : vector<32x64xf32> to vector<31x64xf32>
    %84 = tpu.concatenate %82, %83 in 0 : vector<1x64xf32>, vector<31x64xf32> -> vector<32x64xf32>
    %85 = vector.broadcast %77 : vector<32x1xf32> to vector<32x64xf32>
    %86 = arith.mulf %84, %85 : vector<32x64xf32>
    %87 = vector.extract_strided_slice %56 {offsets = [1, 0], sizes = [31, 64], strides = [1, 1]} : vector<32x64xf32> to vector<31x64xf32>
    %88 = tpu.concatenate %87, %82 in 0 : vector<31x64xf32>, vector<1x64xf32> -> vector<32x64xf32>
    %89 = vector.broadcast %81 : vector<32x1xf32> to vector<32x64xf32>
    %90 = arith.mulf %88, %89 : vector<32x64xf32>
    %91 = tpu.concatenate %86, %56, %90 in 1 : vector<32x64xf32>, vector<32x64xf32>, vector<32x64xf32> -> vector<32x192xf32>
    %92 = arith.truncf %91 : vector<32x192xf32> to vector<32x192xbf16>
    %c0_28 = arith.constant 0 : index
    %c0_29 = arith.constant 0 : index
    %93 = vector.load %arg4[%c0_28, %c0_29] : memref<192x64xbf16, #tpu.memory_space<vmem>>, vector<192x64xbf16>
    %cst_30 = arith.constant dense<0.000000e+00> : vector<32x64xf32>
    %94 = tpu.matmul %92, %93, %cst_30 {dimension_numbers = #tpu.dot_dimension_numbers<[1], [0], [0], [1], [0, 0, 1, 1], [], []>} : vector<32x192xbf16>, vector<192x64xbf16>, vector<32x64xf32> -> vector<32x64xf32>
    %c0_31 = arith.constant 0 : index
    %c0_32 = arith.constant 0 : index
    %95 = vector.load %arg5[%c0_31, %c0_32] : memref<1x64xf32, #tpu.memory_space<vmem>>, vector<1x64xf32>
    %96 = vector.broadcast %95 : vector<1x64xf32> to vector<32x64xf32>
    %97 = arith.addf %94, %96 : vector<32x64xf32>
    %cst_33 = arith.constant dense<0.000000e+00> : vector<64xf32>
    %98 = vector.multi_reduction <add>, %97, %cst_33 [0] : vector<32x64xf32> to vector<64xf32>
    %99 = vector.shape_cast %98 : vector<64xf32> to vector<1x64xf32>
    %100 = arith.mulf %97, %97 : vector<32x64xf32>
    %cst_34 = arith.constant dense<0.000000e+00> : vector<64xf32>
    %101 = vector.multi_reduction <add>, %100, %cst_34 [0] : vector<32x64xf32> to vector<64xf32>
    %102 = vector.shape_cast %101 : vector<64xf32> to vector<1x64xf32>
    %103 = tpu.concatenate %99, %102 in 0 : vector<1x64xf32>, vector<1x64xf32> -> vector<2x64xf32>
    %c0_35 = arith.constant 0 : index
    %c0_36 = arith.constant 0 : index
    %104 = vector.load %arg10[%c0_35, %c0_36] : memref<64x64xf32, #tpu.memory_space<vmem>>, vector<64x64xf32>
    %cst_37 = arith.constant dense<0.000000e+00> : vector<2x64xf32>
    %105 = tpu.matmul %103, %104, %cst_37 {dimension_numbers = #tpu.dot_dimension_numbers<[1], [0], [0], [1], [0, 0, 1, 1], [], []>} : vector<2x64xf32>, vector<64x64xf32>, vector<2x64xf32> -> vector<2x64xf32>
    %cst_38 = arith.constant 3.125000e-02 : f32
    %106 = vector.broadcast %cst_38 : f32 to vector<2x64xf32>
    %107 = arith.mulf %105, %106 : vector<2x64xf32>
    %108 = vector.extract_strided_slice %107 {offsets = [0, 0], sizes = [1, 64], strides = [1, 1]} : vector<2x64xf32> to vector<1x64xf32>
    %109 = vector.extract_strided_slice %107 {offsets = [1, 0], sizes = [1, 64], strides = [1, 1]} : vector<2x64xf32> to vector<1x64xf32>
    %110 = arith.mulf %108, %108 : vector<1x64xf32>
    %111 = arith.subf %109, %110 : vector<1x64xf32>
    %cst_39 = arith.constant 0.000000e+00 : f32
    %112 = vector.broadcast %cst_39 : f32 to vector<1x64xf32>
    %113 = arith.maximumf %111, %112 : vector<1x64xf32>
    %114 = vector.broadcast %108 : vector<1x64xf32> to vector<32x64xf32>
    %115 = arith.subf %97, %114 : vector<32x64xf32>
    %cst_40 = arith.constant 9.99999974E-6 : f32
    %116 = vector.broadcast %cst_40 : f32 to vector<1x64xf32>
    %117 = arith.addf %113, %116 : vector<1x64xf32>
    %118 = math.rsqrt %117 : vector<1x64xf32>
    %119 = vector.broadcast %118 : vector<1x64xf32> to vector<32x64xf32>
    %120 = arith.mulf %115, %119 : vector<32x64xf32>
    %cst_41 = arith.constant 0.000000e+00 : f32
    %121 = vector.broadcast %cst_41 : f32 to vector<32x64xf32>
    %122 = arith.maximumf %120, %121 : vector<32x64xf32>
    %123 = tpu.concatenate %122, %25 in 1 : vector<32x64xf32>, vector<32x256xf32> -> vector<32x320xf32>
    %124 = arith.truncf %123 : vector<32x320xf32> to vector<32x320xbf16>
    %c0_42 = arith.constant 0 : index
    %c0_43 = arith.constant 0 : index
    %125 = vector.load %arg6[%c0_42, %c0_43] : memref<320x128xbf16, #tpu.memory_space<vmem>>, vector<320x128xbf16>
    %cst_44 = arith.constant dense<0.000000e+00> : vector<32x128xf32>
    %126 = tpu.matmul %124, %125, %cst_44 {dimension_numbers = #tpu.dot_dimension_numbers<[1], [0], [0], [1], [0, 0, 1, 1], [], []>} : vector<32x320xbf16>, vector<320x128xbf16>, vector<32x128xf32> -> vector<32x128xf32>
    %c0_45 = arith.constant 0 : index
    %c0_46 = arith.constant 0 : index
    %127 = vector.load %arg7[%c0_45, %c0_46] : memref<1x128xf32, #tpu.memory_space<vmem>>, vector<1x128xf32>
    %128 = vector.broadcast %127 : vector<1x128xf32> to vector<32x128xf32>
    %129 = arith.addf %126, %128 : vector<32x128xf32>
    %c0_47 = arith.constant 0 : index
    %c0_48 = arith.constant 0 : index
    %130 = vector.load %arg8[%c0_47, %c0_48] : memref<256x128xf32, #tpu.memory_space<vmem>>, vector<256x128xf32>
    %cst_49 = arith.constant dense<0.000000e+00> : vector<32x128xf32>
    %131 = tpu.matmul %0, %130, %cst_49 {dimension_numbers = #tpu.dot_dimension_numbers<[1], [0], [0], [1], [0, 0, 1, 1], [], []>} : vector<32x256xf32>, vector<256x128xf32>, vector<32x128xf32> -> vector<32x128xf32>
    %132 = arith.addf %129, %131 : vector<32x128xf32>
    %c0_50 = arith.constant 0 : index
    %c0_51 = arith.constant 0 : index
    %133 = vector.load %arg11[%c0_50, %c0_51] : memref<32x128xf32, #tpu.memory_space<vmem>>, vector<32x128xf32>
    tpu.vector_store %arg11[%c0_50, %c0_51], %132 {strides = array<i32>} : memref<32x128xf32, #tpu.memory_space<vmem>>, vector<32x128xf32>,
    return
  }
  func.func @transform_0(%arg0: i32) -> (i32, i32) {
    %c0_i32 = arith.constant 0 : i32
    %c0_i32_0 = arith.constant 0 : i32
    %c0_i32_1 = arith.constant 0 : i32
    return %c0_i32, %c0_i32_0 : i32, i32
  }
  func.func @transform_1(%arg0: i32) -> (i32, i32) {
    %c0_i32 = arith.constant 0 : i32
    %c0_i32_0 = arith.constant 0 : i32
    %c0_i32_1 = arith.constant 0 : i32
    return %c0_i32, %c0_i32_0 : i32, i32
  }
  func.func @transform_2(%arg0: i32) -> (i32, i32) {
    %c0_i32 = arith.constant 0 : i32
    %c0_i32_0 = arith.constant 0 : i32
    %c0_i32_1 = arith.constant 0 : i32
    return %c0_i32, %c0_i32_0 : i32, i32
  }
  func.func @transform_3(%arg0: i32) -> (i32, i32) {
    %c0_i32 = arith.constant 0 : i32
    %c0_i32_0 = arith.constant 0 : i32
    %c0_i32_1 = arith.constant 0 : i32
    return %c0_i32, %c0_i32_0 : i32, i32
  }
  func.func @transform_4(%arg0: i32) -> (i32, i32) {
    %c0_i32 = arith.constant 0 : i32
    %c0_i32_0 = arith.constant 0 : i32
    %c0_i32_1 = arith.constant 0 : i32
    return %c0_i32, %c0_i32_0 : i32, i32
  }
  func.func @transform_5(%arg0: i32) -> (i32, i32) {
    %c0_i32 = arith.constant 0 : i32
    %c0_i32_0 = arith.constant 0 : i32
    %c0_i32_1 = arith.constant 0 : i32
    return %c0_i32, %c0_i32_0 : i32, i32
  }
  func.func @transform_6(%arg0: i32) -> (i32, i32) {
    %c0_i32 = arith.constant 0 : i32
    %c0_i32_0 = arith.constant 0 : i32
    %c0_i32_1 = arith.constant 0 : i32
    return %c0_i32, %c0_i32_0 : i32, i32
  }
  func.func @transform_7(%arg0: i32) -> (i32, i32) {
    %c0_i32 = arith.constant 0 : i32
    %c0_i32_0 = arith.constant 0 : i32
    %c0_i32_1 = arith.constant 0 : i32
    return %c0_i32, %c0_i32_0 : i32, i32
  }
  func.func @transform_8(%arg0: i32) -> (i32, i32) {
    %c0_i32 = arith.constant 0 : i32
    %c0_i32_0 = arith.constant 0 : i32
    %c0_i32_1 = arith.constant 0 : i32
    return %c0_i32, %c0_i32_0 : i32, i32
  }
  func.func @transform_9(%arg0: i32) -> (i32, i32) {
    %c0_i32 = arith.constant 0 : i32
    %c0_i32_0 = arith.constant 0 : i32
    %c0_i32_1 = arith.constant 0 : i32
    return %c0_i32, %c0_i32_0 : i32, i32
  }
  func.func @transform_10(%arg0: i32) -> (i32, i32) {
    %c0_i32 = arith.constant 0 : i32
    %c0_i32_0 = arith.constant 0 : i32
    %c0_i32_1 = arith.constant 0 : i32
    return %c0_i32, %c0_i32_0 : i32, i32
  }
}

</mosaic_0001>

<bundles_post_ra>
// kernel: tpu_custom_call.1
= control target key start
LH: loop header
LB: loop body
LE: loop exit
PB: predicated region body
PF: predicated region fallthrough
CT: control target
= control target key end

     0   :  { %15 = vsyncpa [#allocation3], 0  ;;  %s2731_s0 = inlined_call_operand.vmem [shape: f32[32,256], index: 0, kind: input, shape index: {}]   ;;  %s2732_s1 = inlined_call_operand.vmem [shape: bf16[256,64], index: 1, kind: input, shape index: {}]   ;;  %s2733_s2 = inlined_call_operand.vmem [shape: f32[1,64], index: 2, kind: input, shape index: {}]   ;;  %s2734_s3 = inlined_call_operand.vmem [shape: bf16[192,64], index: 3, kind: input, shape index: {}]   ;;  %s2735_s4 = inlined_call_operand.vmem [shape: f32[1,64], index: 4, kind: input, shape index: {}]   ;;  %s2736_s5 = inlined_call_operand.hbm [shape: bf16[320,128], index: 5, kind: input, shape index: {}]   ;;  %s2737_s6 = inlined_call_operand.vmem [shape: f32[1,128], index: 6, kind: input, shape index: {}]   ;;  %s2738_s7 = inlined_call_operand.vmem [shape: f32[256,128], index: 7, kind: input, shape index: {}]   ;;  %s2739_s8 = inlined_call_operand.hbm [shape: f32[256,256], index: 8, kind: input, shape index: {}]   ;;  %s2740_s9 = inlined_call_operand.hbm [shape: f32[64,64], index: 9, kind: input, shape index: {}]   ;;  %s2741_s10 = inlined_call_operand.hbm [shape: f32[32,128], index: 10, kind: output, shape index: {}]  }
   0x1   :  { %16 = vsyncpa [#allocation6], 0 }
   0x2   :  { %17 = vsyncpa [#allocation4], 0  ;;  %s2102_s13 = smov [#allocation5]   ;;  %s2008_s17 = scalar_lea.hbm %s2739_s8, 8192 }
   0x3   :  { %s49_s14 = sshll.u32 %s2102_s13, 4  ;;  %p2009_p0 = scmp.ne.s32.totalorder %s2739_s8, %s2008_s17  ;;  %s50_s14 = int_to_ptr.vmem [resolvable:$true] %s49_s14 }
   0x4   :  { %p2012_p1 = scmp.lt.u32.totalorder %s2008_s17, %s2739_s8 }
   0x6   :  { %p2014_p2 = pnand %p2012_p1, %p2009_p0 }
   0x8   :  { %2017 = shalt.err (!%p2014_p2)
}
   0x9   :  { %s2018_s22 = scalar_lea.vmem %s50_s14, 8192  ;;  %p2023_p4 = scmp.lt.s32.totalorder %s50_s14, %s50_s14 }
   0xa   :  { %p2019_p3 = scmp.ne.s32.totalorder %s50_s14, %s2018_s22  ;;  %p2024_p5 = scmp.lt.s32.totalorder %s2018_s22, %s2018_s22 }
   0xc   :  { %p2025_p6 = por %p2024_p5, %p2023_p4 }
   0xe   :  { %p2026_p7 = pnand %p2025_p6, %p2019_p3 }
  0x10   :  { %2029 = shalt.err (!%p2026_p7)
}
  0x11   :  { %s2103_s23 = smov 256   ;;  %s2104_s24 = smov 16  }
  0x12   :  { %55 = dma.hbm_to_vmem [thread:$0]  %s2739_s8, 8192, %s50_s14, [#allocation6], %s2103_s23, %s2103_s23, %s2104_s24  }
  0x13   :  { %s2105_s27 = smov [#allocation2]   ;;  %s2030_s11 = scalar_lea.hbm %s2736_s5, 2560 }
  0x14   :  { %s33_s28 = sshll.u32 %s2105_s27, 4  ;;  %p2031_p8 = scmp.ne.s32.totalorder %s2736_s5, %s2030_s11  ;;  %s34_s28 = int_to_ptr.vmem [resolvable:$true] %s33_s28 }
  0x15   :  { %p2034_p9 = scmp.lt.u32.totalorder %s2030_s11, %s2736_s5 }
  0x17   :  { %p2036_p10 = pnand %p2034_p9, %p2031_p8 }
  0x19   :  { %2039 = shalt.err (!%p2036_p10)
}
  0x1a   :  { %s2040_s17 = scalar_lea.vmem %s34_s28, 2560  ;;  %p2045_p12 = scmp.lt.s32.totalorder %s34_s28, %s34_s28 }
  0x1b   :  { %p2041_p11 = scmp.ne.s32.totalorder %s34_s28, %s2040_s17  ;;  %p2046_p13 = scmp.lt.s32.totalorder %s2040_s17, %s2040_s17 }
  0x1d   :  { %p2047_p0 = por %p2046_p13, %p2045_p12 }
  0x1f   :  { %p2048_p1 = pnand %p2047_p0, %p2041_p11 }
  0x21   :  { %2051 = shalt.err (!%p2048_p1)
}
  0x22   :  { %s2106_s8 = smov 64   ;;  %s2107_s14 = smov 4  }
  0x23   :  { %39 = dma.hbm_to_vmem [thread:$0]  %s2736_s5, 2560, %s34_s28, [#allocation3], %s2106_s8, %s2106_s8, %s2107_s14  }
  0x24   :  { %s2108_s20 = smov [#allocation7]   ;;  %s2052_s24 = scalar_lea.hbm %s2740_s9, 1024 }
  0x25   :  { %s61_s21 = sshll.u32 %s2108_s20, 4  ;;  %p2053_p2 = scmp.ne.s32.totalorder %s2740_s9, %s2052_s24  ;;  %s62_s21 = int_to_ptr.vmem [resolvable:$true] %s61_s21 }
  0x26   :  { %p2056_p3 = scmp.lt.u32.totalorder %s2052_s24, %s2740_s9 }
  0x28   :  { %p2058_p4 = pnand %p2056_p3, %p2053_p2 }
  0x2a   :  { %2061 = shalt.err (!%p2058_p4)
}
  0x2b   :  { %s2062_s30 = scalar_lea.vmem %s62_s21, 1024  ;;  %p2067_p6 = scmp.lt.s32.totalorder %s62_s21, %s62_s21 }
  0x2c   :  { %p2063_p5 = scmp.ne.s32.totalorder %s62_s21, %s2062_s30  ;;  %p2068_p7 = scmp.lt.s32.totalorder %s2062_s30, %s2062_s30 }
  0x2e   :  { %p2069_p8 = por %p2068_p7, %p2067_p6 }
  0x30   :  { %p2070_p9 = pnand %p2069_p8, %p2063_p5 }
  0x32   :  { %2073 = shalt.err (!%p2070_p9)
}
  0x33   :  { %s2109_s5 = smov 128   ;;  %s2110_s28 = smov 8  }
  0x34   :  { %67 = dma.hbm_to_vmem [thread:$0]  %s2740_s9, 1024, %s62_s21, [#allocation6], %s2109_s5, %s2109_s5, %s2110_s28  }
  0x35   :  { %2096 = dma.done.wait [#allocation3], 2560  }
  0x36   :  { %2097 = vsyncadd [#allocation3], 4294964736 }
  0x37   :  { %2098 = dma.done.wait [#allocation6], 9216  }
  0x38   :  { %2099 = vsyncadd [#allocation6], 4294958080  ;;  %v134_v0 = vld [vmem:[#allocation5 + $0x8] sm:$0xff]  ;;  %v136_v1 = vld [vmem:[#allocation5 + $0x18] sm:$0xff]  ;;  %vm130_vm0 = vcmask 1040384   ;;  %vm2112_vm1 = vmmov 0  }
  0x39   :  { %v133_v2 = vld [vmem:[#allocation5] sm:$0xff]  ;;  %v1780_v3 = vpack.c.bf16 %v136_v1, %v134_v0  ;;  %v135_v4 = vld [vmem:[#allocation5 + $0x10] sm:$0xff]  ;;  %v138_v5 = vld [vmem:[#allocation5 + $0x28] sm:$0xff]  ;;  %vm514_vm2 = vcmask 523264   ;;  %vm753_vm5 = vcmask 1046528  }
  0x3a   :  { %v140_v6 = vld [vmem:[#allocation5 + $0x38] sm:$0xff]  ;;  %v1782_v7 = vpack.c.bf16 %v135_v4, %v133_v2  ;;  %v137_v9 = vld [vmem:[#allocation5 + $0x20] sm:$0xff]  ;;  %v139_v10 = vld [vmem:[#allocation5 + $0x30] sm:$0xff] }
  0x3b   :  { %v1784_v8 = vpack.c.bf16 %v140_v6, %v138_v5  ;;  %v142_v11 = vld [vmem:[#allocation5 + $0x48] sm:$0xff]  ;;  %1781 = vmatprep.subr.bf16.mxu0 %v1780_v3  ;;  %v144_v12 = vld [vmem:[#allocation5 + $0x58] sm:$0xff]  ;;  %v1786_v13 = vpack.c.bf16 %v139_v10, %v137_v9  ;;  %v141_v15 = vld [vmem:[#allocation5 + $0x40] sm:$0xff] }
  0x3c   :  { %1783 = vmatpush1.bf16.msra.mxu0 %v1782_v7  ;;  %v1788_v14 = vpack.c.bf16 %v144_v12, %v142_v11  ;;  %v143_v16 = vld [vmem:[#allocation5 + $0x50] sm:$0xff]  ;;  %v146_v17 = vld [vmem:[#allocation5 + $0x68] sm:$0xff]  ;;  %v148_v18 = vld [vmem:[#allocation5 + $0x78] sm:$0xff] }
  0x3d   :  { %1785 = vmatprep.subr.bf16.mxu0 %v1784_v8  ;;  %v1790_v19 = vpack.c.bf16 %v143_v16, %v141_v15  ;;  %v1792_v20 = vpack.c.bf16 %v148_v18, %v146_v17  ;;  %v145_v21 = vld [vmem:[#allocation5 + $0x60] sm:$0xff]  ;;  %v147_v22 = vld [vmem:[#allocation5 + $0x70] sm:$0xff]  ;;  %v150_v23 = vld [vmem:[#allocation5 + $0x88] sm:$0xff] }
  0x3e   :  { %v152_v24 = vld [vmem:[#allocation5 + $0x98] sm:$0xff]  ;;  %v1794_v25 = vpack.c.bf16 %v147_v22, %v145_v21  ;;  %v149_v27 = vld [vmem:[#allocation5 + $0x80] sm:$0xff]  ;;  %v151_v28 = vld [vmem:[#allocation5 + $0x90] sm:$0xff] }
  0x3f   :  { %v1796_v26 = vpack.c.bf16 %v152_v24, %v150_v23  ;;  %v154_v29 = vld [vmem:[#allocation5 + $0xa8] sm:$0xff]  ;;  %v156_v30 = vld [vmem:[#allocation5 + $0xb8] sm:$0xff]  ;;  %v1798_v31 = vpack.c.bf16 %v151_v28, %v149_v27  ;;  %v153_v33 = vld [vmem:[#allocation5 + $0xa0] sm:$0xff] }
  0x40   :  { %1787 = vmatpush1.bf16.msra.mxu0 %v1786_v13  ;;  %v1800_v32 = vpack.c.bf16 %v156_v30, %v154_v29  ;;  %v155_v34 = vld [vmem:[#allocation5 + $0xb0] sm:$0xff]  ;;  %v158_v35 = vld [vmem:[#allocation5 + $0xc8] sm:$0xff]  ;;  %v160_v36 = vld [vmem:[#allocation5 + $0xd8] sm:$0xff] }
  0x41   :  { %1789 = vmatprep.subr.bf16.mxu0 %v1788_v14  ;;  %v1802_v37 = vpack.c.bf16 %v155_v34, %v153_v33  ;;  %v157_v38 = vld [vmem:[#allocation5 + $0xc0] sm:$0xff]  ;;  %v159_v39 = vld [vmem:[#allocation5 + $0xd0] sm:$0xff]  ;;  %v162_v40 = vld [vmem:[#allocation5 + $0xe8] sm:$0xff]  ;;  %v1804_v41 = vpack.c.bf16 %v160_v36, %v158_v35 }
  0x42   :  { %v164_v42 = vld [vmem:[#allocation5 + $0xf8] sm:$0xff]  ;;  %v2215_v43 = vld [vmem:[%s2731_s0 + $0x8] sm:$0xff]  ;;  %v161_v45 = vld [vmem:[#allocation5 + $0xe0] sm:$0xff]  ;;  %v1806_v53 = vpack.c.bf16 %v159_v39, %v157_v38 }
  0x43   :  { %v2220_v44 = vld [vmem:[%s2731_s0 + $0x18] sm:$0xff]  ;;  %v163_v46 = vld [vmem:[#allocation5 + $0xf0] sm:$0xff]  ;;  %v2225_v47 = vld [vmem:[%s2731_s0 + $0x28] sm:$0xff]  ;;  %v105_v50 = vmul.f32 %v2215_v43, %v2215_v43  ;;  %v1808_v2 = vpack.c.bf16 %v164_v42, %v162_v40 }
  0x44   :  { %1791 = vmatpush1.bf16.msra.mxu0 %v1790_v19  ;;  %v2230_v48 = vld [vmem:[%s2731_s0 + $0x38] sm:$0xff]  ;;  %v95_v49 = vadd.f32 %v2220_v44, %v2215_v43  ;;  %v107_v51 = vmul.f32 %v2220_v44, %v2220_v44  ;;  %v2241_v52 = vld [vmem:[%s2731_s0] sm:$0xff]  ;;  %v109_v54 = vmul.f32 %v2225_v47, %v2225_v47  ;;  %v2250_v56 = vld [vmem:[%s2731_s0 + $0x10] sm:$0xff]  ;;  %v1810_v11 = vpack.c.bf16 %v163_v46, %v161_v45 }
  0x45   :  { %1793 = vmatprep.subr.bf16.mxu0 %v1792_v20  ;;  %v111_v55 = vmul.f32 %v2230_v48, %v2230_v48  ;;  %v2255_v57 = vld [vmem:[%s2731_s0 + $0x20] sm:$0xff]  ;;  %v2260_v58 = vld [vmem:[%s2731_s0 + $0x30] sm:$0xff]  ;;  %v104_v59 = vmul.f32 %v2241_v52, %v2241_v52  ;;  %v166_v60 = vld [vmem:[#allocation5 + $0x108] sm:$0xff]  ;;  %v86_v0 = vadd.f32 %v2250_v56, %v2241_v52  ;;  %v106_v1 = vmul.f32 %v2250_v56, %v2250_v56 }
  0x46   :  { %v168_v61 = vld [vmem:[#allocation5 + $0x118] sm:$0xff]  ;;  %v96_v62 = vadd.f32 %v95_v49, %v2225_v47  ;;  %v121_v63 = vadd.f32 %v107_v51, %v105_v50  ;;  %v108_v3 = vmul.f32 %v2255_v57, %v2255_v57  ;;  %v110_v4 = vmul.f32 %v2260_v58, %v2260_v58  ;;  %v165_v5 = vld [vmem:[#allocation5 + $0x100] sm:$0xff]  ;;  %v167_v6 = vld [vmem:[#allocation5 + $0x110] sm:$0xff] }
  0x47   :  { %v87_v9 = vadd.f32 %v86_v0, %v2255_v57  ;;  %v112_v10 = vadd.f32 %v106_v1, %v104_v59  ;;  %v170_v12 = vld [vmem:[#allocation5 + $0x128] sm:$0xff]  ;;  %v172_v13 = vld [vmem:[#allocation5 + $0x138] sm:$0xff]  ;;  %v1812_v18 = vpack.c.bf16 %v168_v61, %v166_v60  ;;  %v169_v19 = vld [vmem:[#allocation5 + $0x120] sm:$0xff] }
  0x48   :  { %1795 = vmatpush1.bf16.msra.mxu0 %v1794_v25  ;;  %v97_v7 = vadd.f32 %v96_v62, %v2230_v48  ;;  %v122_v8 = vadd.f32 %v121_v63, %v109_v54  ;;  %v171_v20 = vld [vmem:[#allocation5 + $0x130] sm:$0xff]  ;;  %v1814_v25 = vpack.c.bf16 %v167_v6, %v165_v5  ;;  %v176_v27 = vld [vmem:[#allocation5 + $0x158] sm:$0xff]  ;;  %v173_v38 = vld [vmem:[#allocation5 + $0x140] sm:$0xff] }
  0x49   :  { %1797 = vmatprep.subr.bf16.mxu0 %v1796_v26  ;;  %v88_v16 = vadd.f32 %v87_v9, %v2260_v58  ;;  %v113_v17 = vadd.f32 %v112_v10, %v108_v3  ;;  %v174_v26 = vld [vmem:[#allocation5 + $0x148] sm:$0xff]  ;;  %v175_v39 = vld [vmem:[#allocation5 + $0x150] sm:$0xff]  ;;  %v180_v50 = vld [vmem:[#allocation5 + $0x178] sm:$0xff] }
  0x4a   :  { %v98_v14 = vrot.slane %v97_v7, 4  ;;  %v123_v15 = vadd.f32 %v122_v8, %v111_v55  ;;  %v178_v40 = vld [vmem:[#allocation5 + $0x168] sm:$0xff]  ;;  %v1820_v49 = vpack.c.bf16 %v176_v27, %v174_v26  ;;  %v177_v55 = vld [vmem:[#allocation5 + $0x160] sm:$0xff]  ;;  %v179_v59 = vld [vmem:[#allocation5 + $0x170] sm:$0xff]  ;;  %v1822_v60 = vpack.c.bf16 %v175_v39, %v173_v38 }
  0x4b   :  { %v89_v23 = vrot.slane %v88_v16, 4  ;;  %v114_v24 = vadd.f32 %v113_v17, %v110_v4  ;;  %v182_v61 = vld [vmem:[#allocation5 + $0x188] sm:$0xff]  ;;  %v184_v62 = vld [vmem:[#allocation5 + $0x198] sm:$0xff]  ;;  %v181_v4 = vld [vmem:[#allocation5 + $0x180] sm:$0xff]  ;;  %v1826_v6 = vpack.c.bf16 %v179_v59, %v177_v55 }
  0x4c   :  { %1799 = vmatpush1.bf16.msra.mxu0 %v1798_v31  ;;  %v99_v21 = vadd.f32 %v98_v14, %v97_v7  ;;  %v124_v22 = vrot.slane %v123_v15, 4  ;;  %v183_v5 = vld [vmem:[#allocation5 + $0x190] sm:$0xff]  ;;  %v186_v7 = vld [vmem:[#allocation5 + $0x1a8] sm:$0xff]  ;;  %v188_v8 = vld [vmem:[#allocation5 + $0x1b8] sm:$0xff]  ;;  %v1828_v9 = vpack.c.bf16 %v184_v62, %v182_v61 }
  0x4d   :  { %1801 = vmatprep.subr.bf16.mxu0 %v1800_v32  ;;  %v90_v30 = vadd.f32 %v89_v23, %v88_v16  ;;  %v115_v31 = vrot.slane %v114_v24, 4  ;;  %v1816_v32 = vpack.c.bf16 %v172_v13, %v170_v12  ;;  %v185_v10 = vld [vmem:[#allocation5 + $0x1a0] sm:$0xff]  ;;  %v1830_v12 = vpack.c.bf16 %v183_v5, %v181_v4  ;;  %v190_v13 = vld [vmem:[#allocation5 + $0x1c8] sm:$0xff]  ;;  %v192_v14 = vld [vmem:[#allocation5 + $0x1d8] sm:$0xff] }
  0x4e   :  { %v100_v28 = vrot.slane %v99_v21, 2  ;;  %v125_v29 = vadd.f32 %v124_v22, %v123_v15  ;;  %v1832_v15 = vpack.c.bf16 %v188_v8, %v186_v7  ;;  %v189_v16 = vld [vmem:[#allocation5 + $0x1c0] sm:$0xff]  ;;  %v191_v17 = vld [vmem:[#allocation5 + $0x1d0] sm:$0xff] }
  0x4f   :  { %v91_v35 = vrot.slane %v90_v30, 2  ;;  %v116_v36 = vadd.f32 %v115_v31, %v114_v24  ;;  %v193_v22 = vld [vmem:[#allocation5 + $0x1e0] sm:$0xff]  ;;  %v195_v23 = vld [vmem:[#allocation5 + $0x1f0] sm:$0xff]  ;;  %v1838_v24 = vpack.c.bf16 %v191_v17, %v189_v16 }
  0x50   :  { %1803 = vmatpush1.bf16.msra.mxu0 %v1802_v37  ;;  %v101_v33 = vadd.f32 %v100_v28, %v99_v21  ;;  %v126_v34 = vrot.slane %v125_v29, 2  ;;  %v1818_v37 = vpack.c.bf16 %v171_v20, %v169_v19  ;;  %v194_v19 = vld [vmem:[#allocation5 + $0x1e8] sm:$0xff]  ;;  %v196_v20 = vld [vmem:[#allocation5 + $0x1f8] sm:$0xff]  ;;  %v1836_v21 = vpack.c.bf16 %v192_v14, %v190_v13  ;;  %v1945_v31 = vld [vmem:[%s2732_s1] sm:$0xff]  }
  0x51   :  { %1805 = vmatprep.subr.bf16.mxu0 %v1804_v41  ;;  %v92_v45 = vadd.f32 %v91_v35, %v90_v30  ;;  %v117_v46 = vrot.slane %v116_v36, 2  ;;  %v1842_v26 = vpack.c.bf16 %v195_v23, %v193_v22  ;;  %v1944_v30 = vld [vmem:[%s2732_s1 + $0x40] sm:$0xff]   ;;  %v1949_v35 = vld [vmem:[%s2732_s1 + $0x10] sm:$0xff]  }
  0x52   :  { %v102_v41 = vrot.slane %v101_v33, 1  ;;  %v127_v42 = vadd.f32 %v126_v34, %v125_v29  ;;  %1606 = vmatprep.subr.bf16.mxu1 %v1944_v30  ;;  %v1948_v34 = vld [vmem:[%s2732_s1 + $0x50] sm:$0xff]   ;;  %v1952_v38 = vld [vmem:[%s2732_s1 + $0x60] sm:$0xff]  }
  0x53   :  { %v118_v54 = vadd.f32 %v117_v46, %v116_v36  ;;  %v93_v0 = vrot.slane %v92_v45, 1  ;;  %1607 = vmatpush3.bf16.msra.mxu1 %v1945_v31  ;;  %v1950_v36 = vld [vmem:[%s2732_s1 + $0x58] sm:$0xff]   ;;  %v1953_v39 = vld [vmem:[%s2732_s1 + $0x20] sm:$0xff]  }
  0x54   :  { %1807 = vmatpush1.bf16.msra.mxu0 %v1806_v53  ;;  %v103_v51 = vadd.f32 %v102_v41, %v101_v33  ;;  %v128_v53 = vrot.slane %v127_v42, 1  ;;  %v1947_v33 = vld [vmem:[%s2732_s1 + $0x8] sm:$0xff]   ;;  %v1958_v46 = vld [vmem:[%s2732_s1 + $0x78] sm:$0xff]  }
  0x55   :  { %1809 = vmatprep.subr.bf16.mxu0 %v1808_v2  ;;  %v119_v1 = vrot.slane %v118_v54, 1  ;;  %v1824_v2 = vpack.c.bf16 %v180_v50, %v178_v40  ;;  %v94_v27 = vadd.f32 %v93_v0, %v92_v45  ;;  %v1954_v40 = vld [vmem:[%s2732_s1 + $0x68] sm:$0xff]   ;;  %v1957_v45 = vld [vmem:[%s2732_s1 + $0x30] sm:$0xff]  }
  0x56   :  { %v129_v63 = vadd.f32 %v128_v53, %v127_v42  ;;  %v1955_v41 = vld [vmem:[%s2732_s1 + $0x28] sm:$0xff]   ;;  %v1956_v42 = vld [vmem:[%s2732_s1 + $0x70] sm:$0xff]  }
  0x57   :  { %v120_v28 = vadd.f32 %v119_v1, %v118_v54 }
  0x58   :  { %1811 = vmatpush1.bf16.msra.mxu0 %v1810_v11  ;;  %v132_v3 = vsel %vm130_vm0, %v103_v51, %v129_v63  ;;  %v187_v11 = vld [vmem:[#allocation5 + $0x1b0] sm:$0xff]  ;;  %v282_v63 = vlaneseq }
  0x59   :  { %1813 = vmatprep.subr.bf16.mxu0 %v1812_v18  ;;  %261 = vmatprep.mubr.f32.mxu0 %v132_v3  ;;  %v1834_v18 = vpack.c.bf16 %v187_v11, %v185_v10  ;;  %v131_v29 = vsel %vm130_vm0, %v94_v27, %v120_v28 }
  0x5a   :  { %v2326_v3 = vshrl.u32 %v282_v63, 7 }
  0x5c   :  { %1815 = vmatpush1.bf16.msra.mxu0 %v1814_v25  ;;  %v1840_v25 = vpack.c.bf16 %v196_v20, %v194_v19 }
  0x5d   :  { %1817 = vmatprep.subr.bf16.mxu0 %v1816_v32  ;;  %v1946_v32 = vld [vmem:[%s2732_s1 + $0x48] sm:$0xff]  }
  0x5e   :  { %1608 = vmatprep.subr.bf16.mxu1 %v1946_v32 }
  0x5f   :  { %1609 = vmatpush3.bf16.msra.mxu1 %v1947_v33 }
  0x60   :  { %1819 = vmatpush1.bf16.msra.mxu0 %v1818_v37  ;;  %1610 = vmatprep.subr.bf16.mxu1 %v1948_v34  ;;  %v1951_v37 = vld [vmem:[%s2732_s1 + $0x18] sm:$0xff]  }
  0x61   :  { %1821 = vmatprep.subr.bf16.mxu0 %v1820_v49  ;;  %v1959_v49 = vld [vmem:[%s2732_s1 + $0x38] sm:$0xff]  }
  0x63   :  { %1611 = vmatpush3.bf16.msra.mxu1 %v1949_v35 }
  0x64   :  { %1823 = vmatpush1.bf16.msra.mxu0 %v1822_v60  ;;  %1612 = vmatprep.subr.bf16.mxu1 %v1950_v36 }
  0x65   :  { %1825 = vmatprep.subr.bf16.mxu0 %v1824_v2 }
  0x67   :  { %1613 = vmatpush3.bf16.msra.mxu1 %v1951_v37 }
  0x68   :  { %1827 = vmatpush1.bf16.msra.mxu0 %v1826_v6  ;;  %1614 = vmatprep.subr.bf16.mxu1 %v1952_v38  ;;  %v2329_v6 = vsub.s32 0, %v2326_v3  ;;  %v546_v38 = vld [vmem:[#allocation7] sm:$0xff] }
  0x69   :  { %1829 = vmatprep.subr.bf16.mxu0 %v1828_v9  ;;  %v2334_v9 = vsub.s32 1, %v2326_v3 }
  0x6b   :  { %1615 = vmatpush3.bf16.msra.mxu1 %v1953_v39  ;;  %v547_v39 = vld [vmem:[#allocation7 + $0x8] sm:$0xff] }
  0x6c   :  { %1831 = vmatpush1.bf16.msra.mxu0 %v1830_v12  ;;  %1616 = vmatprep.subr.bf16.mxu1 %v1954_v40  ;;  %v2351_v40 = vpack.c.bf16 %v547_v39, %v546_v38 }
  0x6d   :  { %1833 = vmatprep.subr.bf16.mxu0 %v1832_v15 }
  0x6f   :  { %1617 = vmatpush3.bf16.msra.mxu1 %v1955_v41  ;;  %v2111_v41 = vmov 0.0|0.0  }
  0x70   :  { %1835 = vmatpush1.bf16.msra.mxu0 %v1834_v18  ;;  %1618 = vmatprep.subr.bf16.mxu1 %v1956_v42  ;;  %v548_v42 = vld [vmem:[#allocation7 + $0x10] sm:$0xff] }
  0x71   :  { %1837 = vmatprep.subr.bf16.mxu0 %v1836_v21 }
  0x73   :  { %1619 = vmatpush3.bf16.msra.mxu1 %v1957_v45  ;;  %v549_v45 = vld [vmem:[#allocation7 + $0x18] sm:$0xff] }
  0x74   :  { %1839 = vmatpush1.bf16.msra.mxu0 %v1838_v24  ;;  %1620 = vmatprep.subr.bf16.mxu1 %v1958_v46  ;;  %v2356_v46 = vpack.c.bf16 %v549_v45, %v548_v42 }
  0x75   :  { %1841 = vmatprep.subr.bf16.mxu0 %v1840_v25 }
  0x77   :  { %1621 = vmatpush3.bf16.msra.mxu1 %v1959_v49  ;;  %v550_v49 = vld [vmem:[#allocation7 + $0x20] sm:$0xff] }
  0x78   :  { %1843 = vmatpush1.bf16.msra.mxu0 %v1842_v26  ;;  %1844 = vmatprep.subr.bf16.mxu1 %v2111_v41 }
  0x7b   :  { %262 = vmatmul.mubr.f32.vlgmr.msra.gmra.mrb[0].mxu0 %v131_v29 }
 0x14e   :  { %v263_v50 = vpop.f32.mrb[0].mxu0 }
 0x14f   :  { %v268_v51 = vmul.f32 0.03125, %v263_v50  ;;  %v265_v53 = vpop.f32.mrb[1].mxu0  ;;  %v551_v50 = vld [vmem:[#allocation7 + $0x28] sm:$0xff] }
 0x150   :  { %v269_v54 = vmul.f32 0.03125, %v265_v53  ;;  %v552_v53 = vld [vmem:[#allocation7 + $0x30] sm:$0xff] }
 0x151   :  { %v270_v55 = vmul.f32 %v268_v51, %v268_v51  ;;  %v285_v7 = vrot.slane %v268_v51, %v2329_v6 }
 0x152   :  { %v271_v59 = vmul.f32 %v269_v54, %v269_v54  ;;  %v289_v8 = vrot.slane %v269_v54, %v2329_v6 }
 0x153   :  { %v274_v60 = vrot.slane %v270_v55, 7  ;;  %v290_v11 = vsub.f32 %v2241_v52, %v285_v7  ;;  %v292_v12 = vsub.f32 %v2250_v56, %v285_v7  ;;  %v296_v16 = vsub.f32 %v2260_v58, %v285_v7 }
 0x154   :  { %v275_v61 = vrot.slane %v271_v59, 7  ;;  %v291_v14 = vsub.f32 %v2215_v43, %v289_v8  ;;  %v294_v17 = vsub.f32 %v2255_v57, %v285_v7  ;;  %v293_v19 = vsub.f32 %v2220_v44, %v289_v8 }
 0x155   :  { %v278_v62 = vsub.f32 %v268_v51, %v274_v60  ;;  %v295_v20 = vsub.f32 %v2225_v47, %v289_v8  ;;  %v297_v21 = vsub.f32 %v2230_v48, %v289_v8  ;;  %v2360_v51 = vpack.c.bf16 %v551_v50, %v550_v49 }
 0x156   :  { %v279_v0 = vsub.f32 %v269_v54, %v275_v61  ;;  %v553_v54 = vld [vmem:[#allocation7 + $0x38] sm:$0xff]  ;;  %v2113_v55 = vmov 0.0  }
 0x157   :  { %v280_v1 = vmax.f32 %v278_v62, 0.0  ;;  %v2365_v59 = vpack.c.bf16 %v553_v54, %v552_v53 }
 0x158   :  { %v281_v2 = vmax.f32 %v279_v0, 0.0 }
 0x159   :  { %v298_v4 = vadd.f32 1e-05, %v280_v1 }
 0x15a   :  { %v299_v5 = vadd.f32 1e-05, %v281_v2 }
 0x15b   :  { %1992 = vrsqrt.f32 %v298_v4 }
 0x15c   :  { %1994 = vrsqrt.f32 %v299_v5 }
 0x165   :  { %v1993_v10 = vpop.eup %1992 }
 0x166   :  { %v1995_v13 = vpop.eup %1994  ;;  %v305_v15 = vrot.slane %v1993_v10, %v2334_v9 }
 0x167   :  { %v309_v18 = vrot.slane %v1995_v13, %v2334_v9  ;;  %v1545_v13 = vld [vmem:[%s2733_s2] ss:$0 sm:$0xff] }
 0x168   :  { %v310_v52 = vmul.f32 %v305_v15, %v290_v11  ;;  %v312_v22 = vmul.f32 %v305_v15, %v292_v12  ;;  %v316_v56 = vmul.f32 %v305_v15, %v296_v16  ;;  %v314_v23 = vmul.f32 %v305_v15, %v294_v17 }
 0x169   :  { %v311_v24 = vmul.f32 %v309_v18, %v291_v14  ;;  %v313_v43 = vmul.f32 %v309_v18, %v293_v19  ;;  %v315_v25 = vmul.f32 %v309_v18, %v295_v20  ;;  %v317_v26 = vmul.f32 %v309_v18, %v297_v21 }
 0x16a   :  { %v318_v27 = vmax.f32 %v310_v52, 0.0  ;;  %v320_v58 = vmax.f32 %v312_v22, 0.0  ;;  %v324_v28 = vmax.f32 %v316_v56, 0.0  ;;  %v322_v57 = vmax.f32 %v314_v23, 0.0 }
 0x16b   :  { %v319_v29 = vmax.f32 %v311_v24, 0.0  ;;  %v321_v30 = vmax.f32 %v313_v43, 0.0  ;;  %v323_v31 = vmax.f32 %v315_v25, 0.0  ;;  %v325_v44 = vmax.f32 %v317_v26, 0.0 }
 0x16c   :  { %v326_v48 = vpack.c.bf16 %v320_v58, %v318_v27  ;;  %v328_v37 = vpack.c.bf16 %v324_v28, %v322_v57 }
 0x16d   :  { %v1924_v32 = vpack.i.bf16 %v319_v29, %v318_v27  ;;  %v327_v47 = vpack.c.bf16 %v321_v30, %v319_v29  ;;  %v1929_v33 = vpack.i.bf16 %v321_v30, %v320_v58  ;;  %v1939_v34 = vpack.i.bf16 %v325_v44, %v324_v28 }
 0x16e   :  { %v2346_v35 = vpack.i.bf16 %v323_v31, %v322_v57  ;;  %v329_v36 = vpack.c.bf16 %v325_v44, %v323_v31 }
 0x16f   :  { %1925 = vrot.lane.b32.xlu1 %v1924_v32, %s2106_s8  ;;  %497 = vmatprep.mubr.bf16.mxu1 %v327_v47 }
 0x170   :  { %498 = vmatmul.mubr.bf16.vlgmr.msra.gmra.mrb[0].mxu1 %v326_v48 }
 0x171   :  { %505 = vmatprep.mubr.bf16.mxu1 %v329_v36  ;;  %1846 = vmatpush3.bf16.msra.mxu1 %v2351_v40 }
 0x172   :  { %1847 = vmatprep.subr.bf16.mxu1 %v2111_v41 }
 0x173   :  { %1930 = vrot.lane.b32.xlu1 %v1929_v33, %s2106_s8 }
 0x175   :  { %1849 = vmatpush3.bf16.msra.mxu1 %v2356_v46 }
 0x176   :  { %1850 = vmatprep.subr.bf16.mxu1 %v2111_v41 }
 0x177   :  { %1940 = vrot.lane.b32.xlu1 %v1939_v34, %s2106_s8 }
 0x178   :  { %506 = vmatmul.mubr.bf16.gmra.mrb[4].mxu1 %v328_v37 }
 0x179   :  { %1746 = vmatprep.mubr.msk.f32.mxu1 %vm2112_vm1, %v2113_v55  ;;  %1852 = vmatpush3.bf16.msra.mxu1 %v2360_v51 }
 0x17a   :  { %1853 = vmatprep.subr.bf16.mxu1 %v2111_v41 }
 0x17d   :  { %1855 = vmatpush3.bf16.msra.mxu1 %v2365_v59 }
 0x1e1   :  { %v2367_v60 = vpop.permute.xlu1 %1925 }
 0x1e2   :  { %v1928_v61 = vunpack.i.h.bf16 %v2367_v60  ;;  %v1927_v62 = vunpack.i.l.bf16 %v2367_v60  ;;  %v1404_v60 = vld [vmem:[%s2738_s7 + $0x10] sm:$0xff] }
 0x1e4   :  { %v1105_v4 = vsel %vm514_vm2, %v1927_v62, %v1928_v61 }
 0x1e5   :  { %v2373_v63 = vpop.permute.xlu1 %1930 }
 0x1e6   :  { %v1933_v0 = vunpack.i.h.bf16 %v2373_v63  ;;  %v1932_v1 = vunpack.i.l.bf16 %v2373_v63 }
 0x1e8   :  { %v2377_v2 = vpack.c.bf16 %v1933_v0, %v1928_v61  ;;  %v1106_v5 = vsel %vm514_vm2, %v1932_v1, %v1933_v0 }
 0x1e9   :  { %v1126_v7 = vpack.c.bf16 %v1106_v5, %v1105_v4 }
 0x1eb   :  { %1336 = vmatprep.mubr.bf16.mxu0 %v1126_v7  ;;  %v1960_v7 = vld [vmem:[%s2734_s3] sm:$0xff]  }
 0x243   :  { %v1622_v8 = vpop.f32.mrb[0].mxu1 }
 0x244   :  { %v1623_v10 = vpop.f32.mrb[1].mxu1 }
 0x245   :  { %v1624_v11 = vadd.f32 %v1623_v10, %v1622_v8  ;;  %v1625_v12 = vpop.f32.mrb[2].mxu1  ;;  %v2114_v8 = vmov 0   ;;  %v1961_v10 = vld [vmem:[%s2734_s3 + $0x8] sm:$0xff]  }
 0x246   :  { %v1626_v14 = vpop.f32.mrb[3].mxu1  ;;  %899 = vmatprep.subr.bf16.mxu1 %v2114_v8 }
 0x247   :  { %v1627_v15 = vadd.f32 %v1626_v14, %v1625_v12  ;;  %v2388_v16 = vadd.f32 %v1624_v11, %v1545_v13  ;;  %v1962_v11 = vld [vmem:[%s2734_s3 + $0x10] sm:$0xff]   ;;  %v1963_v12 = vld [vmem:[%s2734_s3 + $0x18] sm:$0xff]   ;;  %v1965_v14 = vld [vmem:[%s2734_s3 + $0x28] sm:$0xff]  }
 0x249   :  { %v2390_v17 = vadd.f32 %v1627_v15, %v1545_v13  ;;  %v528_v21 = vmul.f32 %v2388_v16, %v2388_v16  ;;  %v515_v24 = vsel %vm514_vm2, %v2388_v16, 0.0  ;;  %v1966_v15 = vld [vmem:[%s2734_s3 + $0x30] sm:$0xff]  }
 0x24b   :  { %v529_v18 = vmul.f32 %v2390_v17, %v2390_v17  ;;  %v1628_v19 = vpop.f32.mrb[4].mxu1  ;;  %v516_v52 = vsel %vm514_vm2, %v2390_v17, 0.0  ;;  %v532_v58 = vsel %vm514_vm2, %v528_v21, 0.0  ;;  %v1970_v21 = vld [vmem:[%s2734_s3 + $0x50] sm:$0xff]  }
 0x24c   :  { %v1629_v20 = vpop.f32.mrb[5].mxu1  ;;  %v517_v27 = vadd.f32 %v516_v52, %v515_v24 }
 0x24d   :  { %v1630_v22 = vadd.f32 %v1629_v20, %v1628_v19  ;;  %v1631_v56 = vpop.f32.mrb[6].mxu1  ;;  %v533_v43 = vsel %vm514_vm2, %v529_v18, 0.0  ;;  %v1967_v18 = vld [vmem:[%s2734_s3 + $0x38] sm:$0xff]   ;;  %v1968_v19 = vld [vmem:[%s2734_s3 + $0x40] sm:$0xff]   ;;  %v1969_v20 = vld [vmem:[%s2734_s3 + $0x48] sm:$0xff]  }
 0x24e   :  { %v1632_v23 = vpop.f32.mrb[7].mxu1  ;;  %v534_v30 = vadd.f32 %v533_v43, %v532_v58 }
 0x24f   :  { %v2401_v25 = vadd.f32 %v1630_v22, %v1545_v13  ;;  %v1633_v26 = vadd.f32 %v1632_v23, %v1631_v56 }
 0x251   :  { %v518_v28 = vsel %vm514_vm2, %v2401_v25, 0.0  ;;  %v530_v57 = vmul.f32 %v2401_v25, %v2401_v25  ;;  %v2408_v29 = vadd.f32 %v1633_v26, %v1545_v13  ;;  %v1964_v13 = vld [vmem:[%s2734_s3 + $0x20] sm:$0xff]  }
 0x252   :  { %v519_v31 = vadd.f32 %v518_v28, %v517_v27  ;;  %v658_v28 = vadd.s32 8, %v2326_v3 }
 0x253   :  { %v535_v44 = vsel %vm514_vm2, %v530_v57, 0.0  ;;  %v520_v32 = vsel %vm514_vm2, %v2408_v29, 0.0  ;;  %v531_v47 = vmul.f32 %v2408_v29, %v2408_v29  ;;  %v660_v57 = vadd.s32 24, %v2326_v3 }
 0x254   :  { %v536_v33 = vadd.f32 %v535_v44, %v534_v30  ;;  %v521_v48 = vadd.f32 %v520_v32, %v519_v31  ;;  %v1971_v30 = vld [vmem:[%s2734_s3 + $0x58] sm:$0xff]   ;;  %v672_v32 = vand.u32 15, %v658_v28 }
 0x255   :  { %v537_v34 = vsel %vm514_vm2, %v531_v47, 0.0  ;;  %v686_v47 = vand.u32 15, %v660_v57 }
 0x256   :  { %v522_v36 = vrot.slane %v521_v48, 4  ;;  %v538_v37 = vadd.f32 %v537_v34, %v536_v33  ;;  %vm722_vm3 = vcmp.lt.s32.totalorder %v672_v32, 15 }
 0x257   :  { %vm724_vm4 = vcmp.lt.s32.totalorder %v686_v47, 15 }
 0x258   :  { %v523_v38 = vadd.f32 %v522_v36, %v521_v48  ;;  %v539_v39 = vrot.slane %v538_v37, 4 }
 0x25a   :  { %v524_v42 = vrot.slane %v523_v38, 2  ;;  %v540_v45 = vadd.f32 %v539_v39, %v538_v37 }
 0x25c   :  { %v525_v49 = vadd.f32 %v524_v42, %v523_v38  ;;  %v541_v50 = vrot.slane %v540_v45, 2 }
 0x25e   :  { %v526_v53 = vrot.slane %v525_v49, 1  ;;  %v542_v54 = vadd.f32 %v541_v50, %v540_v45 }
 0x260   :  { %v543_v61 = vrot.slane %v542_v54, 1  ;;  %v527_v0 = vadd.f32 %v526_v53, %v525_v49 }
 0x262   :  { %v544_v4 = vadd.f32 %v543_v61, %v542_v54 }
 0x264   :  { %v545_v5 = vsel %vm130_vm0, %v527_v0, %v544_v4  ;;  %v1566_v4 = vsel %vm724_vm4, 1.0, %v2113_v55 }
 0x265   :  { %1747 = vmatmul.mubr.msk.f32.vlgmr.msra.gmra.mrb[8].mxu1 %vm514_vm2, %v545_v5 }
 0x266   :  { %900 = vmatpush1.bf16.msra.mxu1 %v1960_v7 }
 0x267   :  { %901 = vmatprep.subr.bf16.mxu1 %v2114_v8 }
 0x26a   :  { %902 = vmatpush1.bf16.msra.mxu1 %v1961_v10 }
 0x26b   :  { %903 = vmatprep.subr.bf16.mxu1 %v2114_v8 }
 0x26e   :  { %904 = vmatpush1.bf16.msra.mxu1 %v1962_v11 }
 0x26f   :  { %905 = vmatprep.subr.bf16.mxu1 %v2114_v8 }
 0x272   :  { %906 = vmatpush1.bf16.msra.mxu1 %v1963_v12 }
 0x273   :  { %907 = vmatprep.subr.bf16.mxu1 %v2114_v8 }
 0x276   :  { %908 = vmatpush1.bf16.msra.mxu1 %v1964_v13 }
 0x277   :  { %909 = vmatprep.subr.bf16.mxu1 %v2114_v8 }
 0x27a   :  { %910 = vmatpush1.bf16.msra.mxu1 %v1965_v14 }
 0x27b   :  { %911 = vmatprep.subr.bf16.mxu1 %v2114_v8 }
 0x27e   :  { %912 = vmatpush1.bf16.msra.mxu1 %v1966_v15 }
 0x27f   :  { %913 = vmatprep.subr.bf16.mxu1 %v2114_v8 }
 0x282   :  { %914 = vmatpush1.bf16.msra.mxu1 %v1967_v18 }
 0x283   :  { %915 = vmatprep.subr.bf16.mxu1 %v2114_v8 }
 0x286   :  { %916 = vmatpush1.bf16.msra.mxu1 %v1968_v19 }
 0x287   :  { %917 = vmatprep.subr.bf16.mxu1 %v2114_v8 }
 0x28a   :  { %918 = vmatpush1.bf16.msra.mxu1 %v1969_v20 }
 0x28b   :  { %919 = vmatprep.subr.bf16.mxu1 %v2114_v8 }
 0x28e   :  { %920 = vmatpush1.bf16.msra.mxu1 %v1970_v21 }
 0x28f   :  { %921 = vmatprep.subr.bf16.mxu1 %v2114_v8 }
 0x292   :  { %922 = vmatpush1.bf16.msra.mxu1 %v1971_v30 }
 0x293   :  { %1856 = vmatprep.subr.bf16.mxu1 %v2111_v41 }
 0x338   :  { %v623_v52 = vpop.f32.mrb[8].mxu1 }
 0x339   :  { %v627_v22 = vmul.f32 0.03125, %v623_v52  ;;  %v1748_v56 = vpop.f32.mrb[9].mxu1 }
 0x33a   :  { %v665_v56 = vand.u32 15, %v2326_v3 }
 0x33b   :  { %v628_v23 = vmul.f32 %v627_v22, %v627_v22  ;;  %v637_v58 = vrot.slane %v627_v22, %v2329_v6 }
 0x33c   :  { %vm709_vm6 = vcmp.gt.s32.totalorder %v665_v56, 0 }
 0x33d   :  { %v630_v24 = vrot.slane %v628_v23, 7  ;;  %v638_v44 = vsub.f32 %v2388_v16, %v637_v58  ;;  %v639_v33 = vsub.f32 %v2390_v17, %v637_v58  ;;  %v640_v34 = vsub.f32 %v2401_v25, %v637_v58 }
 0x33e   :  { %v641_v36 = vsub.f32 %v2408_v29, %v637_v58  ;;  %v1565_v29 = vsel %vm722_vm3, 1.0, %v2113_v55  ;;  %v659_v23 = vadd.s32 16, %v2326_v3 }
 0x33f   :  { %v632_v43 = vsub.f32 %v627_v22, %v630_v24 }
 0x340   :  { %v679_v24 = vand.u32 15, %v659_v23 }
 0x341   :  { %v633_v26 = vmax.f32 %v632_v43, 0.0 }
 0x342   :  { %vm711_vm7 = vcmp.gt.s32.totalorder %v679_v24, 0 }
 0x343   :  { %v642_v27 = vadd.f32 1e-05, %v633_v26  ;;  %v1563_v26 = vsel %vm709_vm6, 1.0, %v2113_v55  ;;  %v1564_v30 = vsel %vm711_vm7, 1.0, %v2113_v55 }
 0x345   :  { %1996 = vrsqrt.f32 %v642_v27 }
 0x34f   :  { %v1997_v31 = vpop.eup %1996 }
 0x350   :  { %v647_v48 = vrot.slane %v1997_v31, %v2334_v9 }
 0x352   :  { %v648_v37 = vmul.f32 %v647_v48, %v638_v44  ;;  %v649_v38 = vmul.f32 %v647_v48, %v639_v33  ;;  %v650_v39 = vmul.f32 %v647_v48, %v640_v34  ;;  %v651_v42 = vmul.f32 %v647_v48, %v641_v36  ;;  %v2484_v44 = vpop.permute.xlu1 %1940 }
 0x353   :  { %v1943_v34 = vunpack.i.h.bf16 %v2484_v44  ;;  %v1942_v36 = vunpack.i.l.bf16 %v2484_v44  ;;  %v1423_v44 = vld [vmem:[%s2738_s7 + $0xa8] sm:$0xff] }
 0x354   :  { %v652_v16 = vmax.f32 %v648_v37, 0.0  ;;  %v653_v45 = vmax.f32 %v649_v38, 0.0  ;;  %v654_v49 = vmax.f32 %v650_v39, 0.0  ;;  %v655_v50 = vmax.f32 %v651_v42, 0.0 }
 0x356   :  { %v738_v17 = vrot.slane %v653_v45, 7  ;;  %v755_v53 = vrot.slane %v653_v45, 1  ;;  %v1914_v54 = vpack.i.bf16 %v653_v45, %v652_v16  ;;  %v737_v61 = vrot.slane %v652_v16, 7 }
 0x357   :  { %v742_v25 = vrot.slane %v655_v50, 7  ;;  %v759_v0 = vrot.slane %v655_v50, 1  ;;  %v754_v5 = vrot.slane %v652_v16, 1  ;;  %v740_v7 = vrot.slane %v654_v49, 7 }
 0x358   :  { %1915 = vrot.lane.b32.xlu0 %v1914_v54, %s2106_s8  ;;  %v757_v8 = vrot.slane %v654_v49, 1  ;;  %v739_v10 = vsel %vm130_vm0, %v737_v61, %v738_v17  ;;  %v1919_v11 = vpack.i.bf16 %v655_v50, %v654_v49  ;;  %v748_v43 = vsel %vm130_vm0, 0.0, %v737_v61 }
 0x359   :  { %v765_v12 = vsel %vm753_vm5, %v759_v0, 0.0  ;;  %v741_v18 = vsel %vm130_vm0, %v738_v17, %v740_v7  ;;  %v743_v20 = vsel %vm130_vm0, %v740_v7, %v742_v25  ;;  %v756_v21 = vsel %vm753_vm5, %v754_v5, %v755_v53  ;;  %v1567_v17 = vld [vmem:[%s2735_s4] ss:$0 sm:$0xff] }
 0x35a   :  { %v758_v13 = vsel %vm753_vm5, %v755_v53, %v757_v8  ;;  %v760_v14 = vsel %vm753_vm5, %v757_v8, %v759_v0  ;;  %v769_v15 = vmul.f32 %v1566_v4, %v765_v12  ;;  %v749_v57 = vmul.f32 %v1563_v26, %v748_v43 }
 0x35b   :  { %v767_v19 = vmul.f32 %v1565_v29, %v758_v13  ;;  %v751_v48 = vmul.f32 %v1564_v30, %v741_v18 }
 0x35c   :  { %1920 = vrot.lane.b32.xlu0 %v1919_v11, %s2106_s8  ;;  %v789_v52 = vpack.c.bf16 %v769_v15, %v760_v14 }
 0x35d   :  { %v787_v22 = vpack.c.bf16 %v767_v19, %v756_v21 }
 0x35f   :  { %1580 = vmatprep.mubr.msk.bf16.mxu1 %vm514_vm2, %v787_v22 }
 0x360   :  { %1935 = vrot.lane.b32.xlu0 %v2346_v35, %s2106_s8 }
 0x3ca   :  { %v1916_v27 = vpop.permute.xlu0 %1915 }
 0x3cb   :  { %v1918_v58 = vunpack.i.h.bf16 %v1916_v27  ;;  %v1917_v28 = vunpack.i.l.bf16 %v1916_v27 }
 0x3cd   :  { %v782_v31 = vsel %vm514_vm2, %v749_v57, %v1917_v28  ;;  %v783_v35 = vsel %vm514_vm2, %v739_v10, %v1918_v58 }
 0x3ce   :  { %v786_v3 = vpack.c.bf16 %v783_v35, %v782_v31  ;;  %v1921_v32 = vpop.permute.xlu0 %1920 }
 0x3cf   :  { %v1923_v47 = vunpack.i.h.bf16 %v1921_v32  ;;  %v1922_v33 = vunpack.i.l.bf16 %v1921_v32 }
 0x3d0   :  { %932 = vmatmul.mubr.bf16.vlgmr.msra.gmra.mrb[12].mxu1 %v786_v3 }
 0x3d1   :  { %1581 = vmatprep.mubr.msk.bf16.mxu1 %vm514_vm2, %v789_v52  ;;  %v784_v37 = vsel %vm514_vm2, %v751_v48, %v1922_v33  ;;  %v785_v38 = vsel %vm514_vm2, %v743_v20, %v1923_v47  ;;  %1858 = vmatpush3.bf16.msra.mxu1 %v2351_v40  ;;  %v2510_v40 = vsel %vm514_vm2, %v1942_v36, %v1943_v34  ;;  %v1973_v48 = vld [vmem:[#allocation2 + $0x88] sm:$0xff]  }
 0x3d2   :  { %v2492_v39 = vpop.permute.xlu0 %1935  ;;  %v788_v42 = vpack.c.bf16 %v785_v38, %v784_v37  ;;  %1859 = vmatprep.subr.bf16.mxu1 %v2111_v41  ;;  %v1974_v38 = vld [vmem:[#allocation2 + $0x90] sm:$0xff]  }
 0x3d3   :  { %v1938_v16 = vunpack.i.h.bf16 %v2492_v39  ;;  %v1937_v45 = vunpack.i.l.bf16 %v2492_v39 }
 0x3d5   :  { %1861 = vmatpush3.bf16.msra.mxu1 %v2356_v46  ;;  %v2503_v49 = vsel %vm514_vm2, %v1937_v45, %v1938_v16  ;;  %v1972_v46 = vld [vmem:[#allocation2 + $0x80] sm:$0xff]  }
 0x3d6   :  { %1862 = vmatprep.subr.bf16.mxu1 %v2111_v41  ;;  %v1129_v50 = vpack.c.bf16 %v2510_v40, %v2503_v49  ;;  %v1425_v49 = vld [vmem:[%s2738_s7 + $0xb8] sm:$0xff] }
 0x3d8   :  { %940 = vmatmul.mubr.bf16.gmra.mrb[16].mxu1 %v788_v42  ;;  %v1975_v42 = vld [vmem:[#allocation2 + $0x98] sm:$0xff]  }
 0x3d9   :  { %1864 = vmatpush3.bf16.msra.mxu1 %v2360_v51  ;;  %1765 = vmatprep.mubr.msk.f32.mxu1 %vm2112_vm1, %v2113_v55 }
 0x3da   :  { %1865 = vmatprep.subr.bf16.mxu1 %v2111_v41 }
 0x3dd   :  { %1867 = vmatpush3.bf16.msra.mxu1 %v2365_v59 }
 0x3de   :  { %1768 = vmatprep.subr.bf16.mxu1 %v1972_v46 }
 0x4a3   :  { %v933_v53 = vpop.f32.mrb[12].mxu1 }
 0x4a4   :  { %v935_v54 = vpop.f32.mrb[13].mxu1  ;;  %v2523_v25 = vadd.f32 %v1567_v17, %v933_v53  ;;  %v1976_v53 = vld [vmem:[#allocation2 + $0x40] sm:$0xff]  }
 0x4a5   :  { %v936_v61 = vpop.f32.mrb[14].mxu1  ;;  %1652 = vmatprep.subr.bf16.mxu0 %v1976_v53  ;;  %v1979_v54 = vld [vmem:[#allocation2 + $0x8] sm:$0xff]  }
 0x4a6   :  { %v2525_v0 = vadd.f32 %v1567_v17, %v936_v61  ;;  %v938_v51 = vpop.f32.mrb[15].mxu1  ;;  %v961_v41 = vmul.f32 %v2523_v25, %v2523_v25  ;;  %v948_v4 = vsel %vm514_vm2, %v2523_v25, 0.0  ;;  %v1980_v61 = vld [vmem:[#allocation2 + $0x50] sm:$0xff]  }
 0x4a7   :  { %v1981_v51 = vld [vmem:[#allocation2 + $0x10] sm:$0xff]  }
 0x4a8   :  { %v962_v55 = vmul.f32 %v2525_v0, %v2525_v0  ;;  %v949_v59 = vsel %vm514_vm2, %v2525_v0, 0.0  ;;  %v965_v12 = vsel %vm514_vm2, %v961_v41, 0.0  ;;  %v1983_v41 = vld [vmem:[#allocation2 + $0x18] sm:$0xff]  }
 0x4a9   :  { %v950_v10 = vadd.f32 %v949_v59, %v948_v4  ;;  %v1984_v59 = vld [vmem:[#allocation2 + $0x60] sm:$0xff]   ;;  %v1988_v4 = vld [vmem:[#allocation2 + $0x70] sm:$0xff]  }
 0x4aa   :  { %v966_v5 = vsel %vm514_vm2, %v962_v55, 0.0  ;;  %v1982_v55 = vld [vmem:[#allocation2 + $0x58] sm:$0xff]  }
 0x4ab   :  { %v941_v29 = vpop.f32.mrb[16].mxu1  ;;  %v967_v19 = vadd.f32 %v966_v5, %v965_v12  ;;  %v1989_v5 = vld [vmem:[#allocation2 + $0x30] sm:$0xff]   ;;  %v1991_v12 = vld [vmem:[#allocation2 + $0x38] sm:$0xff]  }
 0x4ac   :  { %v2536_v7 = vadd.f32 %v1567_v17, %v941_v29  ;;  %v943_v8 = vpop.f32.mrb[17].mxu1  ;;  %v1987_v29 = vld [vmem:[#allocation2 + $0x28] sm:$0xff]  }
 0x4ad   :  { %v944_v11 = vpop.f32.mrb[18].mxu1  ;;  %v1990_v8 = vld [vmem:[#allocation2 + $0x78] sm:$0xff]  }
 0x4ae   :  { %v951_v13 = vsel %vm514_vm2, %v2536_v7, 0.0  ;;  %v963_v14 = vmul.f32 %v2536_v7, %v2536_v7  ;;  %v2543_v15 = vadd.f32 %v1567_v17, %v944_v11  ;;  %v946_v18 = vpop.f32.mrb[19].mxu1  ;;  %v1130_v17 = vpack.c.bf16 %v1943_v34, %v1938_v16  ;;  %v1985_v34 = vld [vmem:[#allocation2 + $0x20] sm:$0xff]   ;;  %v1986_v16 = vld [vmem:[#allocation2 + $0x68] sm:$0xff]  }
 0x4af   :  { %v952_v20 = vadd.f32 %v951_v13, %v950_v10  ;;  %v1418_v10 = vld [vmem:[%s2738_s7 + $0x80] sm:$0xff]  ;;  %v1419_v11 = vld [vmem:[%s2738_s7 + $0x88] sm:$0xff] }
 0x4b0   :  { %v968_v21 = vsel %vm514_vm2, %v963_v14, 0.0  ;;  %v953_v52 = vsel %vm514_vm2, %v2543_v15, 0.0  ;;  %v964_v22 = vmul.f32 %v2543_v15, %v2543_v15  ;;  %v1868_v13 = vpack.c.bf16 %v1419_v11, %v1418_v10  ;;  %v1428_v10 = vld [vmem:[%s2738_s7 + $0xd0] sm:$0xff]  ;;  %v1429_v11 = vld [vmem:[%s2738_s7 + $0xd8] sm:$0xff] }
 0x4b1   :  { %v969_v56 = vadd.f32 %v968_v21, %v967_v19  ;;  %v954_v23 = vadd.f32 %v953_v52, %v952_v20 }
 0x4b2   :  { %v970_v24 = vsel %vm514_vm2, %v964_v22, 0.0 }
 0x4b3   :  { %v955_v43 = vrot.slane %v954_v23, 4  ;;  %v971_v26 = vadd.f32 %v970_v24, %v969_v56 }
 0x4b5   :  { %v956_v27 = vadd.f32 %v955_v43, %v954_v23  ;;  %v972_v58 = vrot.slane %v971_v26, 4 }
 0x4b7   :  { %v957_v28 = vrot.slane %v956_v27, 2  ;;  %v973_v57 = vadd.f32 %v972_v58, %v971_v26 }
 0x4b9   :  { %v958_v30 = vadd.f32 %v957_v28, %v956_v27  ;;  %v974_v31 = vrot.slane %v973_v57, 2 }
 0x4bb   :  { %v959_v35 = vrot.slane %v958_v30, 1  ;;  %v975_v3 = vadd.f32 %v974_v31, %v973_v57 }
 0x4bd   :  { %v976_v32 = vrot.slane %v975_v3, 1  ;;  %v960_v47 = vadd.f32 %v959_v35, %v958_v30 }
 0x4bf   :  { %v977_v33 = vadd.f32 %v976_v32, %v975_v3 }
 0x4c1   :  { %v978_v37 = vsel %vm130_vm0, %v960_v47, %v977_v33  ;;  %v1402_v47 = vld [vmem:[%s2738_s7] sm:$0xff] }
 0x4c2   :  { %1766 = vmatmul.mubr.msk.f32.vlgmr.msra.gmra.mrb[10].mxu1 %vm514_vm2, %v978_v37 }
 0x4c3   :  { %1769 = vmatpush3.bf16.msra.mxu1 %v1972_v46  ;;  %1776 = vmatprep.mubr.msk.bf16.mxu1 %vm514_vm2, %v2377_v2  ;;  %v1977_v46 = vld [vmem:[#allocation2] sm:$0xff]   ;;  %v1978_v2 = vld [vmem:[#allocation2 + $0x48] sm:$0xff]  }
 0x4c4   :  { %1770 = vmatprep.subr.bf16.mxu1 %v1973_v48  ;;  %1653 = vmatpush3.bf16.msra.mxu0 %v1977_v46 }
 0x4c5   :  { %1654 = vmatprep.subr.bf16.mxu0 %v1978_v2 }
 0x4c7   :  { %1771 = vmatpush3.bf16.msra.mxu1 %v1973_v48 }
 0x4c8   :  { %1772 = vmatprep.subr.bf16.mxu1 %v1974_v38  ;;  %1655 = vmatpush3.bf16.msra.mxu0 %v1979_v54 }
 0x4c9   :  { %1656 = vmatprep.subr.bf16.mxu0 %v1980_v61  ;;  %v1407_v61 = vld [vmem:[%s2738_s7 + $0x28] sm:$0xff] }
 0x4cb   :  { %1773 = vmatpush3.bf16.msra.mxu1 %v1974_v38 }
 0x4cc   :  { %1774 = vmatprep.subr.bf16.mxu1 %v1975_v42  ;;  %1657 = vmatpush3.bf16.msra.mxu0 %v1981_v51  ;;  %v1424_v51 = vld [vmem:[%s2738_s7 + $0xb0] sm:$0xff] }
 0x4cd   :  { %1658 = vmatprep.subr.bf16.mxu0 %v1982_v55  ;;  %v1408_v55 = vld [vmem:[%s2738_s7 + $0x30] sm:$0xff] }
 0x4cf   :  { %1775 = vmatpush3.bf16.msra.mxu1 %v1975_v42 }
 0x4d0   :  { %1659 = vmatpush3.bf16.msra.mxu0 %v1983_v41  ;;  %v1409_v41 = vld [vmem:[%s2738_s7 + $0x38] sm:$0xff] }
 0x4d1   :  { %1660 = vmatprep.subr.bf16.mxu0 %v1984_v59  ;;  %v1426_v59 = vld [vmem:[%s2738_s7 + $0xc0] sm:$0xff] }
 0x4d2   :  { %1777 = vmatmul.mubr.msk.bf16.vlgmr.msra.gmra.mrb[20].mxu1 %vm514_vm2, %v1130_v17 }
 0x4d4   :  { %1661 = vmatpush3.bf16.msra.mxu0 %v1985_v34  ;;  %v1427_v34 = vld [vmem:[%s2738_s7 + $0xc8] sm:$0xff] }
 0x4d5   :  { %1662 = vmatprep.subr.bf16.mxu0 %v1986_v16  ;;  %v1882_v16 = vpack.c.bf16 %v1409_v41, %v1408_v55 }
 0x4d8   :  { %1663 = vmatpush3.bf16.msra.mxu0 %v1987_v29  ;;  %v2000_v29 = vld [vmem:[%s2731_s0 + $0x8] sm:$0xff] }
 0x4d9   :  { %1664 = vmatprep.subr.bf16.mxu0 %v1988_v4  ;;  %v1884_v4 = vpack.c.bf16 %v1427_v34, %v1426_v59 }
 0x4dc   :  { %1665 = vmatpush3.bf16.msra.mxu0 %v1989_v5  ;;  %v1410_v5 = vld [vmem:[%s2738_s7 + $0x40] sm:$0xff] }
 0x4dd   :  { %1666 = vmatprep.subr.bf16.mxu0 %v1990_v8  ;;  %v1411_v8 = vld [vmem:[%s2738_s7 + $0x48] sm:$0xff] }
 0x4e0   :  { %1667 = vmatpush3.bf16.msra.mxu0 %v1991_v12  ;;  %v1886_v12 = vpack.c.bf16 %v1411_v8, %v1410_v5 }
 0x4e1   :  { %1869 = vmatprep.subr.bf16.mxu0 %v1868_v13  ;;  %v1888_v13 = vpack.c.bf16 %v1429_v11, %v1428_v10 }
 0x595   :  { %v1048_v14 = vpop.f32.mrb[10].mxu1 }
 0x596   :  { %v1052_v18 = vmul.f32 0.03125, %v1048_v14  ;;  %v1767_v19 = vpop.f32.mrb[11].mxu1  ;;  %v1412_v14 = vld [vmem:[%s2738_s7 + $0x50] sm:$0xff] }
 0x597   :  { %v1430_v19 = vld [vmem:[%s2738_s7 + $0xe0] sm:$0xff] }
 0x598   :  { %v1053_v20 = vmul.f32 %v1052_v18, %v1052_v18  ;;  %v1062_v26 = vrot.slane %v1052_v18, %v2329_v6  ;;  %v1403_v6 = vld [vmem:[%s2738_s7 + $0x8] sm:$0xff] }
 0x599   :  { %v1870_v38 = vpack.c.bf16 %v1403_v6, %v1402_v47  ;;  %v2003_v47 = vld [vmem:[%s2731_s0 + $0x10] sm:$0xff]  ;;  %v2004_v6 = vld [vmem:[%s2731_s0 + $0x28] sm:$0xff] }
 0x59a   :  { %v1055_v21 = vrot.slane %v1053_v20, 7  ;;  %v1063_v28 = vsub.f32 %v2523_v25, %v1062_v26  ;;  %v1064_v57 = vsub.f32 %v2525_v0, %v1062_v26  ;;  %v1065_v31 = vsub.f32 %v2536_v7, %v1062_v26  ;;  %v1421_v7 = vld [vmem:[%s2738_s7 + $0x98] sm:$0xff]  ;;  %v1431_v20 = vld [vmem:[%s2738_s7 + $0xe8] sm:$0xff] }
 0x59b   :  { %v1066_v35 = vsub.f32 %v2543_v15, %v1062_v26  ;;  %v1432_v26 = vld [vmem:[%s2738_s7 + $0xf0] sm:$0xff] }
 0x59c   :  { %v1057_v52 = vsub.f32 %v1052_v18, %v1055_v21  ;;  %v1413_v18 = vld [vmem:[%s2738_s7 + $0x58] sm:$0xff] }
 0x59d   :  { %v1890_v21 = vpack.c.bf16 %v1413_v18, %v1412_v14 }
 0x59e   :  { %v1058_v22 = vmax.f32 %v1057_v52, 0.0  ;;  %v1892_v52 = vpack.c.bf16 %v1431_v20, %v1430_v19 }
 0x5a0   :  { %v1067_v56 = vadd.f32 1e-05, %v1058_v22  ;;  %v1414_v22 = vld [vmem:[%s2738_s7 + $0x60] sm:$0xff] }
 0x5a2   :  { %1998 = vrsqrt.f32 %v1067_v56  ;;  %v1415_v56 = vld [vmem:[%s2738_s7 + $0x68] sm:$0xff] }
 0x5a5   :  { %v2566_v23 = vpop.f32.mrb[20].mxu1 }
 0x5a6   :  { %v2568_v24 = vpop.f32.mrb[21].mxu1 }
 0x5a7   :  { %v2570_v43 = vpop.f32.mrb[22].mxu1 }
 0x5a8   :  { %v2573_v27 = vpop.f32.mrb[23].mxu1 }
 0x5ac   :  { %v1999_v58 = vpop.eup %1998 }
 0x5ad   :  { %v1072_v30 = vrot.slane %v1999_v58, %v2334_v9  ;;  %v1420_v9 = vld [vmem:[%s2738_s7 + $0x90] sm:$0xff]  ;;  %v1433_v58 = vld [vmem:[%s2738_s7 + $0xf8] sm:$0xff] }
 0x5ae   :  { %v1872_v54 = vpack.c.bf16 %v1421_v7, %v1420_v9  ;;  %v1583_v9 = vld [vmem:[%s2737_s6] ss:$0 sm:$0xff] }
 0x5af   :  { %v1073_v3 = vmul.f32 %v1072_v30, %v1063_v28  ;;  %v1074_v32 = vmul.f32 %v1072_v30, %v1064_v57  ;;  %v1075_v33 = vmul.f32 %v1072_v30, %v1065_v31  ;;  %v1076_v25 = vmul.f32 %v1072_v30, %v1066_v35  ;;  %v1416_v30 = vld [vmem:[%s2738_s7 + $0x70] sm:$0xff]  ;;  %v1417_v31 = vld [vmem:[%s2738_s7 + $0x78] sm:$0xff] }
 0x5b0   :  { %v1894_v28 = vpack.c.bf16 %v1415_v56, %v1414_v22  ;;  %v1896_v57 = vpack.c.bf16 %v1433_v58, %v1432_v26  ;;  %v1898_v35 = vpack.c.bf16 %v1417_v31, %v1416_v30 }
 0x5b1   :  { %v1077_v48 = vmax.f32 %v1073_v3, 0.0  ;;  %v1078_v0 = vmax.f32 %v1074_v32, 0.0  ;;  %v1079_v15 = vmax.f32 %v1075_v33, 0.0  ;;  %v1080_v37 = vmax.f32 %v1076_v25, 0.0  ;;  %v2001_v3 = vld [vmem:[%s2731_s0] sm:$0xff]  ;;  %v2002_v32 = vld [vmem:[%s2731_s0 + $0x18] sm:$0xff] }
 0x5b2   :  { %v2005_v33 = vld [vmem:[%s2731_s0 + $0x20] sm:$0xff]  ;;  %v2006_v25 = vld [vmem:[%s2731_s0 + $0x38] sm:$0xff] }
 0x5b3   :  { %v1121_v42 = vsel %vm514_vm2, %v1077_v48, %v1927_v62  ;;  %v1122_v17 = vsel %vm514_vm2, %v1078_v0, %v1932_v1  ;;  %v1123_v53 = vsel %vm514_vm2, %v1079_v15, %v1937_v45  ;;  %v1124_v46 = vsel %vm514_vm2, %v1080_v37, %v1942_v36  ;;  %v1405_v62 = vld [vmem:[%s2738_s7 + $0x18] sm:$0xff]  ;;  %v1422_v1 = vld [vmem:[%s2738_s7 + $0xa0] sm:$0xff]  ;;  %v2007_v48 = vld [vmem:[%s2731_s0 + $0x30] sm:$0xff]  ;;  %s2115_s0 = smov [#allocation8]  }
 0x5b4   :  { %v1125_v2 = vpack.c.bf16 %v1122_v17, %v1121_v42  ;;  %v1128_v63 = vpack.c.bf16 %v1124_v46, %v1123_v53  ;;  %v1874_v36 = vpack.c.bf16 %v1405_v62, %v1404_v60  ;;  %v1876_v39 = vpack.c.bf16 %v1423_v44, %v1422_v1  ;;  %v1406_v45 = vld [vmem:[%s2738_s7 + $0x20] sm:$0xff]  ;;  %s1532_s6 = sshll.u32 %s2115_s0, 4  ;;  %s1533_s6 = int_to_ptr.vmem [resolvable:$true] %s1532_s6 }
 0x5b5   :  { %v1878_v40 = vpack.c.bf16 %v1407_v61, %v1406_v45  ;;  %s2074_s27 = scalar_lea.vmem %s1533_s6, 512  ;;  %p2079_p11 = scmp.lt.s32.totalorder %s1533_s6, %s1533_s6 }
 0x5b6   :  { %1337 = vmatmul.mubr.bf16.vlgmr.msra.gmra.mrb[4].mxu0 %v1125_v2  ;;  %p2075_p10 = scmp.ne.s32.totalorder %s1533_s6, %s2074_s27  ;;  %p2080_p12 = scmp.lt.s32.totalorder %s2074_s27, %s2074_s27 }
 0x5b7   :  { %1871 = vmatpush3.bf16.msra.mxu0 %v1870_v38  ;;  %1344 = vmatprep.mubr.bf16.mxu0 %v1129_v50  ;;  %v1880_v50 = vpack.c.bf16 %v1425_v49, %v1424_v51 }
 0x5b8   :  { %1873 = vmatprep.subr.bf16.mxu0 %v1872_v54  ;;  %p2081_p13 = por %p2080_p12, %p2079_p11 }
 0x5ba   :  { %p2082_p0 = pnand %p2081_p13, %p2075_p10 }
 0x5bb   :  { %1875 = vmatpush3.bf16.msra.mxu0 %v1874_v36 }
 0x5bc   :  { %1877 = vmatprep.subr.bf16.mxu0 %v1876_v39 }
 0x5be   :  { %1345 = vmatmul.mubr.bf16.gmra.mrb[8].mxu0 %v1128_v63 }
 0x5bf   :  { %1879 = vmatpush3.bf16.msra.mxu0 %v1878_v40  ;;  %1498 = vmatprep.mubr.f32.mxu0 %v2000_v29 }
 0x5c0   :  { %1881 = vmatprep.subr.bf16.mxu0 %v1880_v50 }
 0x5c3   :  { %1883 = vmatpush3.bf16.msra.mxu0 %v1882_v16 }
 0x5c4   :  { %1885 = vmatprep.subr.bf16.mxu0 %v1884_v4 }
 0x5c7   :  { %1887 = vmatpush3.bf16.msra.mxu0 %v1886_v12 }
 0x5c8   :  { %1889 = vmatprep.subr.bf16.mxu0 %v1888_v13 }
 0x5cb   :  { %1891 = vmatpush3.bf16.msra.mxu0 %v1890_v21 }
 0x5cc   :  { %1893 = vmatprep.subr.bf16.mxu0 %v1892_v52 }
 0x5cf   :  { %1895 = vmatpush3.bf16.msra.mxu0 %v1894_v28 }
 0x5d0   :  { %1897 = vmatprep.subr.bf16.mxu0 %v1896_v57 }
 0x5d3   :  { %1899 = vmatpush3.bf16.msra.mxu0 %v1898_v35 }
 0x5d6   :  { %1499 = vmatmul.mubr.f32.vlgmr.msra.gmra.mrb[2].mxu0 %v2001_v3 }
 0x5d7   :  { %1503 = vmatprep.mubr.f32.mxu0 %v2002_v32 }
 0x5da   :  { %1504 = vmatmul.mubr.f32.gmra.mrb[12].mxu0 %v2003_v47 }
 0x5db   :  { %1508 = vmatprep.mubr.f32.mxu0 %v2004_v6 }
 0x5de   :  { %1509 = vmatmul.mubr.f32.gmra.mrb[14].mxu0 %v2005_v33 }
 0x5df   :  { %1513 = vmatprep.mubr.f32.mxu0 %v2006_v25 }
 0x5e2   :  { %1514 = vmatmul.mubr.f32.gmra.mrb[16].mxu0 %v2007_v48 }
 0x689   :  { %v1668_v0 = vpop.f32.mrb[4].mxu0 }
 0x68a   :  { %v1669_v7 = vpop.f32.mrb[5].mxu0 }
 0x68b   :  { %v1670_v15 = vadd.f32 %v1669_v7, %v1668_v0  ;;  %v1671_v37 = vpop.f32.mrb[6].mxu0 }
 0x68c   :  { %v1672_v38 = vpop.f32.mrb[7].mxu0 }
 0x68d   :  { %v1339_v42 = vadd.f32 %v1670_v15, %v1583_v9  ;;  %v1673_v17 = vadd.f32 %v1672_v38, %v1671_v37 }
 0x68f   :  { %v1342_v53 = vadd.f32 %v1673_v17, %v1583_v9  ;;  %v1388_v46 = vadd.f32 %v2568_v24, %v1339_v42 }
 0x691   :  { %v1674_v2 = vpop.f32.mrb[8].mxu0  ;;  %v1391_v54 = vadd.f32 %v2573_v27, %v1342_v53 }
 0x692   :  { %v1675_v60 = vpop.f32.mrb[9].mxu0 }
 0x693   :  { %v1676_v62 = vadd.f32 %v1675_v60, %v1674_v2  ;;  %v1677_v63 = vpop.f32.mrb[10].mxu0 }
 0x694   :  { %v1678_v1 = vpop.f32.mrb[11].mxu0 }
 0x695   :  { %v1347_v44 = vadd.f32 %v1676_v62, %v1583_v9  ;;  %v1679_v36 = vadd.f32 %v1678_v1, %v1677_v63 }
 0x697   :  { %v1350_v39 = vadd.f32 %v1679_v36, %v1583_v9  ;;  %v1396_v45 = vadd.f32 %v2566_v23, %v1347_v44 }
 0x699   :  { %v1399_v61 = vadd.f32 %v2570_v43, %v1350_v39 }
 0x6a9   :  { %v1718_v51 = vpop.f32.mrb[2].mxu0 }
 0x6aa   :  { %v1719_v49 = vpop.f32.mrb[3].mxu0 }
 0x6ab   :  { %v1720_v40 = vadd.f32 %v1719_v49, %v1718_v51 }
 0x6ad   :  { %v1519_v50 = vadd.f32 %v1720_v40, %v1388_v46  ;;  %v1721_v55 = vpop.f32.mrb[12].mxu0 }
 0x6ae   :  { %v1722_v24 = vpop.f32.mrb[13].mxu0 }
 0x6af   :  { %1523 = vst [vmem:[#allocation8] sm:$0xff] %v1519_v50  ;;  %v1723_v41 = vadd.f32 %v1722_v24, %v1721_v55 }
 0x6b1   :  { %v1520_v27 = vadd.f32 %v1723_v41, %v1391_v54  ;;  %v1724_v59 = vpop.f32.mrb[14].mxu0 }
 0x6b2   :  { %v1725_v34 = vpop.f32.mrb[15].mxu0 }
 0x6b3   :  { %1524 = vst [vmem:[#allocation8 + $0x8] sm:$0xff] %v1520_v27  ;;  %v1726_v16 = vadd.f32 %v1725_v34, %v1724_v59 }
 0x6b5   :  { %v1521_v29 = vadd.f32 %v1726_v16, %v1396_v45  ;;  %v1727_v4 = vpop.f32.mrb[16].mxu0 }
 0x6b6   :  { %v1728_v5 = vpop.f32.mrb[17].mxu0 }
 0x6b7   :  { %1525 = vst [vmem:[#allocation8 + $0x10] sm:$0xff] %v1521_v29  ;;  %v1729_v23 = vadd.f32 %v1728_v5, %v1727_v4 }
 0x6b9   :  { %v1522_v43 = vadd.f32 %v1729_v23, %v1399_v61 }
 0x6bb   :  { %1526 = vst [vmem:[#allocation8 + $0x18] sm:$0xff] %v1522_v43 }
 0x6bc   :  { %2085 = shalt.err (!%p2082_p0)
}
 0x6bd   :  { %s2086_s11 = scalar_lea.hbm %s2741_s10, 512 }
 0x6be   :  { %p2087_p1 = scmp.ne.s32.totalorder %s2741_s10, %s2086_s11  ;;  %p2090_p2 = scmp.lt.u32.totalorder %s2086_s11, %s2741_s10 }
 0x6c0   :  { %p2092_p3 = pnand %p2090_p2, %p2087_p1 }
 0x6c2   :  { %2095 = shalt.err (!%p2092_p3)
}
 0x6c3   :  { %1538 = dma.vmem_to_hbm [thread:$0]  %s1533_s6, 512, %s2741_s10, [#allocation4], %s2109_s5, %s2109_s5, %s2110_s28  }
 0x6c4   :  { %2100 = dma.done.wait [#allocation4], 512  }
 0x6c5   :  { %2101 = vsyncadd [#allocation4], 4294966784 }
 0x6c6   :  { %1542 = vsyncpa [#allocation3], 1 }
 0x6c7   :  { %1543 = vsyncpa [#allocation6], 1 }
 0x6c8   :  { %1544 = vsyncpa [#allocation4], 1 }

</bundles_post_ra>
